<compile_context>
chip_gen: v7x
topology: tpu7x:2x2x1
jax: 0.10.0
libtpu: 0.0.40
codegen_flags: <defaults>
</compile_context>

<pallas_src>
import functools

import jax
import jax.numpy as jnp
import numpy as np
from jax.experimental import pallas as pl
from jax.experimental.pallas import tpu as pltpu

_SIGMA = 0.85        # sig_loss_wo_log default
_OUT_SUB = 8
_OUT_LANES = 128

# Explicit scoped-VMEM limit: below physical VMEM on every generation
# (v7x: 64 MiB per TensorCore; v5e/v6e: 128 MiB) and well above the
# 16/32 MiB scoped defaults, so large tiles never silently spill.
_VMEM_LIMIT_BYTES = 48 << 20


def _depth_loss_kernel(p_ref, t_ref, m_ref, out_ref, *, valid_rows, ragged):
    """Per-spatial-tile partial sums for DepthLoss (rescale-free inner loop)."""
    p = p_ref[...].astype(jnp.float32)
    t = t_ref[...].astype(jnp.float32)
    m = m_ref[...]
    mask = m if m.dtype == jnp.bool_ else (m != 0)

    B, C, TH, TW = p.shape

    # Iotas shared by the parity masks and the ragged row guard.
    hh = jax.lax.broadcasted_iota(jnp.int32, (TH, TW), 0)
    ww = jax.lax.broadcasted_iota(jnp.int32, (TH, TW), 1)
    hw_or = hh | ww

    # Affine rescale folded out:  ((t+1)/2*max_depth > 0)  <=>  (t > -1),
    # and diff_scaled = 0.5*max_depth * diff_raw (scale applied in epilogue).
    valid = mask & (t > -1.0)
    if ragged:
        # Rows past H in the last (partial) tile contain garbage: mask them.
        row0 = pl.program_id(0) * TH
        valid = valid & ((row0 + hh) < valid_rows)
    validf = valid.astype(jnp.float32)
    # Select (not multiply) so garbage rows can never inject NaN/Inf.
    diff = jnp.where(valid, p - t, 0.0)

    # ----- sig-loss partials (full resolution, unscaled) -----
    sum_g = jnp.sum(diff)
    sum_g2 = jnp.sum(diff * diff)

    # ----- gradient-loss partials -----
    # "v": pairs (b, b+2) along dim 0;  "h": pairs (c, c+2) along dim 1 —
    # exactly the slicing the reference applies to the 4-D tensor.
    if B > 2:
        vpair = jnp.abs(diff[: B - 2] - diff[2:]) * (validf[: B - 2] * validf[2:])
        v_hw = jnp.sum(vpair, axis=(0, 1))            # (TH, TW)
    else:
        v_hw = jnp.zeros((TH, TW), jnp.float32)
    if C > 2:
        hpair = (jnp.abs(diff[:, : C - 2] - diff[:, 2:])
                 * (validf[:, : C - 2] * validf[:, 2:]))
        h_hw = jnp.sum(hpair, axis=(0, 1))            # (TH, TW)
    else:
        h_hw = jnp.zeros((TH, TW), jnp.float32)
    n_hw = jnp.sum(validf, axis=(0, 1))               # (TH, TW)

    # ::2 / ::4 spatial downsampling as parity masks. Tile starts are
    # multiples of 8, so local parity == global parity.
    #   (h%2==0)&(w%2==0) <=> ((h|w)&1)==0 ;  (h%4==0)&(w%4==0) <=> ((h|w)&3)==0
    sel2 = ((hw_or & 1) == 0).astype(jnp.float32)
    sel4b = ((hw_or & 2) == 0).astype(jnp.float32)    # sel4 = sel2 * sel4b

    n2_hw = n_hw * sel2
    v2_hw = v_hw * sel2
    h2_hw = h_hw * sel2

    n1, v1, h1 = jnp.sum(n_hw), jnp.sum(v_hw), jnp.sum(h_hw)
    n2, v2, h2 = jnp.sum(n2_hw), jnp.sum(v2_hw), jnp.sum(h2_hw)
    n4 = jnp.sum(n2_hw * sel4b)
    v4 = jnp.sum(v2_hw * sel4b)
    h4 = jnp.sum(h2_hw * sel4b)

    vals = (n1, sum_g, sum_g2, v1, h1, n2, v2, h2, n4, v4, h4)

    # Lane-dense (1, 8, 128) output row per grid step (no cross-step accumulator).
    lane = jax.lax.broadcasted_iota(jnp.int32, (1, _OUT_SUB, _OUT_LANES), 2)
    sub = jax.lax.broadcasted_iota(jnp.int32, (1, _OUT_SUB, _OUT_LANES), 1)
    row0_mask = sub == 0
    blk = jnp.zeros((1, _OUT_SUB, _OUT_LANES), jnp.float32)
    for idx, v in enumerate(vals):
        blk = jnp.where(row0_mask & (lane == idx), v, blk)
    out_ref[...] = blk


def _pick_tile_h(B, C, H, W, budget_bytes):
    """Pick a sublane-aligned spatial tile height.

    Preferences: fits `budget_bytes` of f32 per input block; >= 2 grid steps
    when H >= 16 (so both v7x TensorCores get work); exact divisor of H when
    it is not much smaller than the cap; otherwise 32-row alignment (native
    int8 sublane packing for the mask).
    """
    if H <= 8:
        return H
    per_row = max(1, B * C * W * 4)                       # f32 bytes per row/input
    cap = max(8, (budget_bytes // per_row) // 8 * 8)
    if H >= 16:
        cap = min(cap, max(8, ((H + 1) // 2) // 8 * 8))   # >= 2 grid steps
    cap = min(cap, max(8, (H // 8) * 8))
    candidates = list(range(8, cap + 1, 8))
    divisors = [t for t in candidates if H % t == 0]
    if divisors and 2 * max(divisors) >= cap:
        return max(divisors)                              # no ragged tail, near-max size
    mult32 = [t for t in candidates if t % 32 == 0]
    return max(mult32) if mult32 else cap                 # ragged tail handled in-kernel


def depth_loss(pred, target, valid_mask, *, weight_sig=2.0, weight_grad=0.5,
               max_depth=10.0, sigma=_SIGMA, tile_h=None):
    """DepthLoss.forward -> (loss_s, loss_g)."""
    assert pred.shape == target.shape == valid_mask.shape
    assert pred.ndim == 4
    assert max_depth > 0
    B, C, H, W = pred.shape

    # valid_mask travels in its native dtype — no wrapper-side materialized
    # copy.  bool is viewed as int8 only because i1 memrefs are not
    # universally supported by Mosaic; it is the same 1 byte/px either way.
    if valid_mask.dtype == jnp.bool_:
        valid_mask = valid_mask.astype(jnp.int8)
    mask_bytes = jnp.dtype(valid_mask.dtype).itemsize

    # Per-input f32 block budget derived from the explicit VMEM limit:
    # ~2x double-buffered (pred + target + mask) blocks + ~6 full-block f32
    # temporaries in the body + 1 block of headroom.
    expansion = 2.0 * (2.0 + mask_bytes / 4.0) + 6.0 + 1.0
    block_budget = int(_VMEM_LIMIT_BYTES / expansion)

    if tile_h is None:
        tile_h = _pick_tile_h(B, C, H, W, block_budget)
    assert tile_h == H or tile_h % 8 == 0
    n_tiles = pl.cdiv(H, tile_h)
    ragged = (H % tile_h) != 0

    # TODO(synk): if W % 128 != 0 for real workloads, present a lane-dense
    #             last dim (reshape/pad in the caller) — lane occupancy < 1
    #             wastes DMA and VPU throughput proportionally.
    in_spec = pl.BlockSpec((B, C, tile_h, W), lambda i: (0, 0, i, 0))
    out = pl.pallas_call(
        functools.partial(_depth_loss_kernel, valid_rows=H, ragged=ragged),
        out_shape=jax.ShapeDtypeStruct((n_tiles, _OUT_SUB, _OUT_LANES), jnp.float32),
        grid=(n_tiles,),
        in_specs=[in_spec, in_spec, in_spec],
        out_specs=pl.BlockSpec((1, _OUT_SUB, _OUT_LANES), lambda i: (i, 0, 0)),
        compiler_params=pltpu.CompilerParams(
            dimension_semantics=("parallel",),
            vmem_limit_bytes=_VMEM_LIMIT_BYTES),
    )(pred, target, valid_mask)

    # Tiny epilogue over ~11 scalars in plain JAX; the folded 0.5*max_depth
    # scale is re-applied here (everything is linear/quadratic in it).
    parts = jnp.sum(out[:, 0, :], axis=0)
    n1, sum_g, sum_g2 = parts[0], parts[1], parts[2]
    v1, h1 = parts[3], parts[4]
    n2, v2, h2 = parts[5], parts[6], parts[7]
    n4, v4, h4 = parts[8], parts[9], parts[10]

    half_md = 0.5 * float(max_depth)
    # sig_loss_wo_log: sqrt(mean(g^2) - sigma * mean(g)^2) over valid pixels.
    mean_g = sum_g / n1
    loss_s = weight_sig * half_md * jnp.sqrt(sum_g2 / n1 - sigma * mean_g * mean_g)
    # gradient_loss_wo_log: sum over scales of (sum_h + sum_v) / N_scale.
    # TODO(synk): an all-invalid input (N == 0) yields inf/nan exactly like the
    #             reference PyTorch code -- no epsilon is added on purpose.
    loss_g = weight_grad * half_md * ((h1 + v1) / n1 + (h2 + v2) / n2 + (h4 + v4) / n4)
    return loss_s, loss_g


def _reference_depth_loss(pred, target, valid_mask, *, weight_sig=2.0,
                          weight_grad=0.5, max_depth=10.0, sigma=_SIGMA):
    """Pure-JAX transcription of the PyTorch DepthLoss.forward."""
    p = (pred.astype(jnp.float32) + 1.0) / 2.0 * max_depth
    t = (target.astype(jnp.float32) + 1.0) / 2.0 * max_depth
    t = jnp.where(valid_mask == 0, 0.0, t)

    # sig_loss_wo_log
    valid = t > 0
    n = jnp.sum(valid)
    g = jnp.where(valid, p - t, 0.0)
    loss_s = weight_sig * jnp.sqrt(jnp.sum(g * g) / n - sigma * (jnp.sum(g) / n) ** 2)

    # gradient_loss_wo_log (literal 4-D slicing of the reference code)
    gl = 0.0
    for s in (1, 2, 4):
        ps = p[:, :, ::s, ::s]
        ts = t[:, :, ::s, ::s]
        v = ts > 0
        N = jnp.sum(v)
        d = (ps - ts) * v
        vg = jnp.abs(d[0:-2] - d[2:]) * (v[0:-2] & v[2:])
        hg = jnp.abs(d[:, 0:-2] - d[:, 2:]) * (v[:, 0:-2] & v[:, 2:])
        gl = gl + (jnp.sum(hg) + jnp.sum(vg)) / N
    return loss_s, weight_grad * gl


if __name__ == "__main__":
    key = jax.random.PRNGKey(0)
    # B >= 3 and C >= 3 so both gradient terms (dim-0 / dim-1 pairs with a gap
    # of 2, exactly as the reference slices the 4-D tensor) are exercised.
    B, C, H, W = 4, 4, 16, 16
    kp, kt, km = jax.random.split(key, 3)
    pred = jax.random.uniform(kp, (B, C, H, W), jnp.float32, -1.0, 1.0)
    target = jax.random.uniform(kt, (B, C, H, W), jnp.float32, -1.0, 1.0)
    valid_mask = jax.random.uniform(km, (B, C, H, W), jnp.float32) > 0.3

    loss_s, loss_g = depth_loss(pred, target, valid_mask)
    jax.block_until_ready((loss_s, loss_g))

    ref_s, ref_g = _reference_depth_loss(pred, target, valid_mask)
    np.testing.assert_allclose(float(loss_s), float(ref_s), rtol=1e-4, atol=1e-5)
    np.testing.assert_allclose(float(loss_g), float(ref_g), rtol=1e-4, atol=1e-5)
    print("KERNEL_OK")
</pallas_src>

<mosaic_0001>
module attributes {stable_mosaic.version = 11 : i64} {
  func.func @_depth_loss_kernel(%arg0: i32, %arg1: memref<4x4x8x16xf32, #tpu.memory_space<vmem>>, %arg2: memref<4x4x8x16xf32, #tpu.memory_space<vmem>>, %arg3: memref<4x4x8x16xi8, #tpu.memory_space<vmem>>, %arg4: memref<1x8x128xf32, #tpu.memory_space<vmem>>) attributes {dimension_semantics = [#tpu.dimension_semantics<parallel>], iteration_bounds = array<i64: 2>, scalar_prefetch = 0 : i64, scratch_operands = 0 : i64, tpu.core_type = #tpu.core_type<tc>, window_params = [{transform_indices = @transform_0, window_bounds = array<i64: 4, 4, 8, 16>}, {transform_indices = @transform_1, window_bounds = array<i64: 4, 4, 8, 16>}, {transform_indices = @transform_2, window_bounds = array<i64: 4, 4, 8, 16>}, {transform_indices = @transform_3, window_bounds = array<i64: 1, 8, 128>}]} {
    %c0 = arith.constant 0 : index
    %c0_0 = arith.constant 0 : index
    %c0_1 = arith.constant 0 : index
    %c0_2 = arith.constant 0 : index
    %0 = vector.load %arg1[%c0, %c0_0, %c0_1, %c0_2] : memref<4x4x8x16xf32, #tpu.memory_space<vmem>>, vector<4x4x8x16xf32>
    %c0_3 = arith.constant 0 : index
    %c0_4 = arith.constant 0 : index
    %c0_5 = arith.constant 0 : index
    %c0_6 = arith.constant 0 : index
    %1 = vector.load %arg2[%c0_3, %c0_4, %c0_5, %c0_6] : memref<4x4x8x16xf32, #tpu.memory_space<vmem>>, vector<4x4x8x16xf32>
    %c0_7 = arith.constant 0 : index
    %c0_8 = arith.constant 0 : index
    %c0_9 = arith.constant 0 : index
    %c0_10 = arith.constant 0 : index
    %2 = vector.load %arg3[%c0_7, %c0_8, %c0_9, %c0_10] : memref<4x4x8x16xi8, #tpu.memory_space<vmem>>, vector<4x4x8x16xi8>
    %c0_i8 = arith.constant 0 : i8
    %3 = vector.broadcast %c0_i8 : i8 to vector<4x4x8x16xi8>
    %4 = arith.cmpi ne, %2, %3 : vector<4x4x8x16xi8>
    %5 = tpu.iota {dimensions = array<i32: 0>} : vector<8x16xi32>
    %6 = tpu.iota {dimensions = array<i32: 1>} : vector<8x16xi32>
    %7 = arith.ori %5, %6 : vector<8x16xi32>
    %cst = arith.constant -1.000000e+00 : f32
    %8 = vector.broadcast %cst : f32 to vector<4x4x8x16xf32>
    %9 = arith.cmpf ogt, %1, %8 : vector<4x4x8x16xf32>
    %10 = arith.andi %4, %9 : vector<4x4x8x16xi1>
    %11 = arith.extui %10 : vector<4x4x8x16xi1> to vector<4x4x8x16xi32>
    %12 = arith.sitofp %11 : vector<4x4x8x16xi32> to vector<4x4x8x16xf32>
    %13 = arith.subf %0, %1 : vector<4x4x8x16xf32>
    %cst_11 = arith.constant 0.000000e+00 : f32
    %14 = vector.broadcast %cst_11 : f32 to vector<4x4x8x16xf32>
    %15 = arith.select %10, %13, %14 : vector<4x4x8x16xi1>, vector<4x4x8x16xf32>
    %16 = vector.shape_cast %15 : vector<4x4x8x16xf32> to vector<1x4x4x8x16xf32>
    %cst_12 = arith.constant dense<0.000000e+00> : vector<1xf32>
    %17 = vector.multi_reduction <add>, %16, %cst_12 [1, 2, 3, 4] : vector<1x4x4x8x16xf32> to vector<1xf32>
    %18 = vector.shape_cast %17 : vector<1xf32> to vector<1x1x1x1x1xf32>
    %19 = vector.extract %18[0, 0, 0, 0, 0] : f32 from vector<1x1x1x1x1xf32>
    %20 = arith.mulf %15, %15 : vector<4x4x8x16xf32>
    %21 = vector.shape_cast %20 : vector<4x4x8x16xf32> to vector<1x4x4x8x16xf32>
    %cst_13 = arith.constant dense<0.000000e+00> : vector<1xf32>
    %22 = vector.multi_reduction <add>, %21, %cst_13 [1, 2, 3, 4] : vector<1x4x4x8x16xf32> to vector<1xf32>
    %23 = vector.shape_cast %22 : vector<1xf32> to vector<1x1x1x1x1xf32>
    %24 = vector.extract %23[0, 0, 0, 0, 0] : f32 from vector<1x1x1x1x1xf32>
    %25 = vector.extract_strided_slice %15 {offsets = [0, 0, 0, 0], sizes = [2, 4, 8, 16], strides = [1, 1, 1, 1]} : vector<4x4x8x16xf32> to vector<2x4x8x16xf32>
    %26 = vector.extract_strided_slice %15 {offsets = [2, 0, 0, 0], sizes = [2, 4, 8, 16], strides = [1, 1, 1, 1]} : vector<4x4x8x16xf32> to vector<2x4x8x16xf32>
    %27 = arith.subf %25, %26 : vector<2x4x8x16xf32>
    %28 = math.absf %27 : vector<2x4x8x16xf32>
    %29 = vector.extract_strided_slice %12 {offsets = [0, 0, 0, 0], sizes = [2, 4, 8, 16], strides = [1, 1, 1, 1]} : vector<4x4x8x16xf32> to vector<2x4x8x16xf32>
    %30 = vector.extract_strided_slice %12 {offsets = [2, 0, 0, 0], sizes = [2, 4, 8, 16], strides = [1, 1, 1, 1]} : vector<4x4x8x16xf32> to vector<2x4x8x16xf32>
    %31 = arith.mulf %29, %30 : vector<2x4x8x16xf32>
    %32 = arith.mulf %28, %31 : vector<2x4x8x16xf32>
    %cst_14 = arith.constant dense<0.000000e+00> : vector<8x16xf32>
    %33 = vector.multi_reduction <add>, %32, %cst_14 [0, 1] : vector<2x4x8x16xf32> to vector<8x16xf32>
    %34 = vector.extract_strided_slice %15 {offsets = [0, 0, 0, 0], sizes = [4, 2, 8, 16], strides = [1, 1, 1, 1]} : vector<4x4x8x16xf32> to vector<4x2x8x16xf32>
    %35 = vector.extract_strided_slice %15 {offsets = [0, 2, 0, 0], sizes = [4, 2, 8, 16], strides = [1, 1, 1, 1]} : vector<4x4x8x16xf32> to vector<4x2x8x16xf32>
    %36 = arith.subf %34, %35 : vector<4x2x8x16xf32>
    %37 = math.absf %36 : vector<4x2x8x16xf32>
    %38 = vector.extract_strided_slice %12 {offsets = [0, 0, 0, 0], sizes = [4, 2, 8, 16], strides = [1, 1, 1, 1]} : vector<4x4x8x16xf32> to vector<4x2x8x16xf32>
    %39 = vector.extract_strided_slice %12 {offsets = [0, 2, 0, 0], sizes = [4, 2, 8, 16], strides = [1, 1, 1, 1]} : vector<4x4x8x16xf32> to vector<4x2x8x16xf32>
    %40 = arith.mulf %38, %39 : vector<4x2x8x16xf32>
    %41 = arith.mulf %37, %40 : vector<4x2x8x16xf32>
    %cst_15 = arith.constant dense<0.000000e+00> : vector<8x16xf32>
    %42 = vector.multi_reduction <add>, %41, %cst_15 [0, 1] : vector<4x2x8x16xf32> to vector<8x16xf32>
    %cst_16 = arith.constant dense<0.000000e+00> : vector<8x16xf32>
    %43 = vector.multi_reduction <add>, %12, %cst_16 [0, 1] : vector<4x4x8x16xf32> to vector<8x16xf32>
    %c1_i32 = arith.constant 1 : i32
    %44 = vector.broadcast %c1_i32 : i32 to vector<8x16xi32>
    %45 = arith.andi %7, %44 : vector<8x16xi32>
    %c0_i32 = arith.constant 0 : i32
    %46 = vector.broadcast %c0_i32 : i32 to vector<8x16xi32>
    %47 = arith.cmpi eq, %45, %46 : vector<8x16xi32>
    %48 = arith.extui %47 : vector<8x16xi1> to vector<8x16xi32>
    %49 = arith.sitofp %48 : vector<8x16xi32> to vector<8x16xf32>
    %c2_i32 = arith.constant 2 : i32
    %50 = vector.broadcast %c2_i32 : i32 to vector<8x16xi32>
    %51 = arith.andi %7, %50 : vector<8x16xi32>
    %c0_i32_17 = arith.constant 0 : i32
    %52 = vector.broadcast %c0_i32_17 : i32 to vector<8x16xi32>
    %53 = arith.cmpi eq, %51, %52 : vector<8x16xi32>
    %54 = arith.extui %53 : vector<8x16xi1> to vector<8x16xi32>
    %55 = arith.sitofp %54 : vector<8x16xi32> to vector<8x16xf32>
    %56 = arith.mulf %43, %49 : vector<8x16xf32>
    %57 = arith.mulf %33, %49 : vector<8x16xf32>
    %58 = arith.mulf %42, %49 : vector<8x16xf32>
    %59 = vector.shape_cast %43 : vector<8x16xf32> to vector<1x8x16xf32>
    %cst_18 = arith.constant dense<0.000000e+00> : vector<1xf32>
    %60 = vector.multi_reduction <add>, %59, %cst_18 [1, 2] : vector<1x8x16xf32> to vector<1xf32>
    %61 = vector.shape_cast %60 : vector<1xf32> to vector<1x1x1xf32>
    %62 = vector.extract %61[0, 0, 0] : f32 from vector<1x1x1xf32>
    %63 = vector.shape_cast %33 : vector<8x16xf32> to vector<1x8x16xf32>
    %cst_19 = arith.constant dense<0.000000e+00> : vector<1xf32>
    %64 = vector.multi_reduction <add>, %63, %cst_19 [1, 2] : vector<1x8x16xf32> to vector<1xf32>
    %65 = vector.shape_cast %64 : vector<1xf32> to vector<1x1x1xf32>
    %66 = vector.extract %65[0, 0, 0] : f32 from vector<1x1x1xf32>
    %67 = vector.shape_cast %42 : vector<8x16xf32> to vector<1x8x16xf32>
    %cst_20 = arith.constant dense<0.000000e+00> : vector<1xf32>
    %68 = vector.multi_reduction <add>, %67, %cst_20 [1, 2] : vector<1x8x16xf32> to vector<1xf32>
    %69 = vector.shape_cast %68 : vector<1xf32> to vector<1x1x1xf32>
    %70 = vector.extract %69[0, 0, 0] : f32 from vector<1x1x1xf32>
    %71 = vector.shape_cast %56 : vector<8x16xf32> to vector<1x8x16xf32>
    %cst_21 = arith.constant dense<0.000000e+00> : vector<1xf32>
    %72 = vector.multi_reduction <add>, %71, %cst_21 [1, 2] : vector<1x8x16xf32> to vector<1xf32>
    %73 = vector.shape_cast %72 : vector<1xf32> to vector<1x1x1xf32>
    %74 = vector.extract %73[0, 0, 0] : f32 from vector<1x1x1xf32>
    %75 = vector.shape_cast %57 : vector<8x16xf32> to vector<1x8x16xf32>
    %cst_22 = arith.constant dense<0.000000e+00> : vector<1xf32>
    %76 = vector.multi_reduction <add>, %75, %cst_22 [1, 2] : vector<1x8x16xf32> to vector<1xf32>
    %77 = vector.shape_cast %76 : vector<1xf32> to vector<1x1x1xf32>
    %78 = vector.extract %77[0, 0, 0] : f32 from vector<1x1x1xf32>
    %79 = vector.shape_cast %58 : vector<8x16xf32> to vector<1x8x16xf32>
    %cst_23 = arith.constant dense<0.000000e+00> : vector<1xf32>
    %80 = vector.multi_reduction <add>, %79, %cst_23 [1, 2] : vector<1x8x16xf32> to vector<1xf32>
    %81 = vector.shape_cast %80 : vector<1xf32> to vector<1x1x1xf32>
    %82 = vector.extract %81[0, 0, 0] : f32 from vector<1x1x1xf32>
    %83 = arith.mulf %56, %55 : vector<8x16xf32>
    %84 = vector.shape_cast %83 : vector<8x16xf32> to vector<1x8x16xf32>
    %cst_24 = arith.constant dense<0.000000e+00> : vector<1xf32>
    %85 = vector.multi_reduction <add>, %84, %cst_24 [1, 2] : vector<1x8x16xf32> to vector<1xf32>
    %86 = vector.shape_cast %85 : vector<1xf32> to vector<1x1x1xf32>
    %87 = vector.extract %86[0, 0, 0] : f32 from vector<1x1x1xf32>
    %88 = arith.mulf %57, %55 : vector<8x16xf32>
    %89 = vector.shape_cast %88 : vector<8x16xf32> to vector<1x8x16xf32>
    %cst_25 = arith.constant dense<0.000000e+00> : vector<1xf32>
    %90 = vector.multi_reduction <add>, %89, %cst_25 [1, 2] : vector<1x8x16xf32> to vector<1xf32>
    %91 = vector.shape_cast %90 : vector<1xf32> to vector<1x1x1xf32>
    %92 = vector.extract %91[0, 0, 0] : f32 from vector<1x1x1xf32>
    %93 = arith.mulf %58, %55 : vector<8x16xf32>
    %94 = vector.shape_cast %93 : vector<8x16xf32> to vector<1x8x16xf32>
    %cst_26 = arith.constant dense<0.000000e+00> : vector<1xf32>
    %95 = vector.multi_reduction <add>, %94, %cst_26 [1, 2] : vector<1x8x16xf32> to vector<1xf32>
    %96 = vector.shape_cast %95 : vector<1xf32> to vector<1x1x1xf32>
    %97 = vector.extract %96[0, 0, 0] : f32 from vector<1x1x1xf32>
    %98 = tpu.iota {dimensions = array<i32: 2>} : vector<1x8x128xi32>
    %99 = tpu.iota {dimensions = array<i32: 1>} : vector<1x8x128xi32>
    %c0_i32_27 = arith.constant 0 : i32
    %100 = vector.broadcast %c0_i32_27 : i32 to vector<1x8x128xi32>
    %101 = arith.cmpi eq, %99, %100 : vector<1x8x128xi32>
    %cst_28 = arith.constant 0.000000e+00 : f32
    %102 = vector.broadcast %cst_28 : f32 to vector<1x8x128xf32>
    %c0_i32_29 = arith.constant 0 : i32
    %103 = vector.broadcast %c0_i32_29 : i32 to vector<1x8x128xi32>
    %104 = arith.cmpi eq, %98, %103 : vector<1x8x128xi32>
    %105 = arith.andi %101, %104 : vector<1x8x128xi1>
    %106 = vector.broadcast %62 : f32 to vector<1x8x128xf32>
    %107 = arith.select %105, %106, %102 : vector<1x8x128xi1>, vector<1x8x128xf32>
    %c1_i32_30 = arith.constant 1 : i32
    %108 = vector.broadcast %c1_i32_30 : i32 to vector<1x8x128xi32>
    %109 = arith.cmpi eq, %98, %108 : vector<1x8x128xi32>
    %110 = arith.andi %101, %109 : vector<1x8x128xi1>
    %111 = vector.broadcast %19 : f32 to vector<1x8x128xf32>
    %112 = arith.select %110, %111, %107 : vector<1x8x128xi1>, vector<1x8x128xf32>
    %c2_i32_31 = arith.constant 2 : i32
    %113 = vector.broadcast %c2_i32_31 : i32 to vector<1x8x128xi32>
    %114 = arith.cmpi eq, %98, %113 : vector<1x8x128xi32>
    %115 = arith.andi %101, %114 : vector<1x8x128xi1>
    %116 = vector.broadcast %24 : f32 to vector<1x8x128xf32>
    %117 = arith.select %115, %116, %112 : vector<1x8x128xi1>, vector<1x8x128xf32>
    %c3_i32 = arith.constant 3 : i32
    %118 = vector.broadcast %c3_i32 : i32 to vector<1x8x128xi32>
    %119 = arith.cmpi eq, %98, %118 : vector<1x8x128xi32>
    %120 = arith.andi %101, %119 : vector<1x8x128xi1>
    %121 = vector.broadcast %66 : f32 to vector<1x8x128xf32>
    %122 = arith.select %120, %121, %117 : vector<1x8x128xi1>, vector<1x8x128xf32>
    %c4_i32 = arith.constant 4 : i32
    %123 = vector.broadcast %c4_i32 : i32 to vector<1x8x128xi32>
    %124 = arith.cmpi eq, %98, %123 : vector<1x8x128xi32>
    %125 = arith.andi %101, %124 : vector<1x8x128xi1>
    %126 = vector.broadcast %70 : f32 to vector<1x8x128xf32>
    %127 = arith.select %125, %126, %122 : vector<1x8x128xi1>, vector<1x8x128xf32>
    %c5_i32 = arith.constant 5 : i32
    %128 = vector.broadcast %c5_i32 : i32 to vector<1x8x128xi32>
    %129 = arith.cmpi eq, %98, %128 : vector<1x8x128xi32>
    %130 = arith.andi %101, %129 : vector<1x8x128xi1>
    %131 = vector.broadcast %74 : f32 to vector<1x8x128xf32>
    %132 = arith.select %130, %131, %127 : vector<1x8x128xi1>, vector<1x8x128xf32>
    %c6_i32 = arith.constant 6 : i32
    %133 = vector.broadcast %c6_i32 : i32 to vector<1x8x128xi32>
    %134 = arith.cmpi eq, %98, %133 : vector<1x8x128xi32>
    %135 = arith.andi %101, %134 : vector<1x8x128xi1>
    %136 = vector.broadcast %78 : f32 to vector<1x8x128xf32>
    %137 = arith.select %135, %136, %132 : vector<1x8x128xi1>, vector<1x8x128xf32>
    %c7_i32 = arith.constant 7 : i32
    %138 = vector.broadcast %c7_i32 : i32 to vector<1x8x128xi32>
    %139 = arith.cmpi eq, %98, %138 : vector<1x8x128xi32>
    %140 = arith.andi %101, %139 : vector<1x8x128xi1>
    %141 = vector.broadcast %82 : f32 to vector<1x8x128xf32>
    %142 = arith.select %140, %141, %137 : vector<1x8x128xi1>, vector<1x8x128xf32>
    %c8_i32 = arith.constant 8 : i32
    %143 = vector.broadcast %c8_i32 : i32 to vector<1x8x128xi32>
    %144 = arith.cmpi eq, %98, %143 : vector<1x8x128xi32>
    %145 = arith.andi %101, %144 : vector<1x8x128xi1>
    %146 = vector.broadcast %87 : f32 to vector<1x8x128xf32>
    %147 = arith.select %145, %146, %142 : vector<1x8x128xi1>, vector<1x8x128xf32>
    %c9_i32 = arith.constant 9 : i32
    %148 = vector.broadcast %c9_i32 : i32 to vector<1x8x128xi32>
    %149 = arith.cmpi eq, %98, %148 : vector<1x8x128xi32>
    %150 = arith.andi %101, %149 : vector<1x8x128xi1>
    %151 = vector.broadcast %92 : f32 to vector<1x8x128xf32>
    %152 = arith.select %150, %151, %147 : vector<1x8x128xi1>, vector<1x8x128xf32>
    %c10_i32 = arith.constant 10 : i32
    %153 = vector.broadcast %c10_i32 : i32 to vector<1x8x128xi32>
    %154 = arith.cmpi eq, %98, %153 : vector<1x8x128xi32>
    %155 = arith.andi %101, %154 : vector<1x8x128xi1>
    %156 = vector.broadcast %97 : f32 to vector<1x8x128xf32>
    %157 = arith.select %155, %156, %152 : vector<1x8x128xi1>, vector<1x8x128xf32>
    %c0_32 = arith.constant 0 : index
    %c0_33 = arith.constant 0 : index
    %c0_34 = arith.constant 0 : index
    %158 = vector.load %arg4[%c0_32, %c0_33, %c0_34] : memref<1x8x128xf32, #tpu.memory_space<vmem>>, vector<1x8x128xf32>
    tpu.vector_store %arg4[%c0_32, %c0_33, %c0_34], %157 {strides = array<i32>} : memref<1x8x128xf32, #tpu.memory_space<vmem>>, vector<1x8x128xf32>,
    return
  }
  func.func @transform_0(%arg0: i32) -> (i32, i32, i32, i32) {
    %c0_i32 = arith.constant 0 : i32
    %c0_i32_0 = arith.constant 0 : i32
    %c0_i32_1 = arith.constant 0 : i32
    %c0_i32_2 = arith.constant 0 : i32
    return %c0_i32, %c0_i32_0, %arg0, %c0_i32_1 : i32, i32, i32, i32
  }
  func.func @transform_1(%arg0: i32) -> (i32, i32, i32, i32) {
    %c0_i32 = arith.constant 0 : i32
    %c0_i32_0 = arith.constant 0 : i32
    %c0_i32_1 = arith.constant 0 : i32
    %c0_i32_2 = arith.constant 0 : i32
    return %c0_i32, %c0_i32_0, %arg0, %c0_i32_1 : i32, i32, i32, i32
  }
  func.func @transform_2(%arg0: i32) -> (i32, i32, i32, i32) {
    %c0_i32 = arith.constant 0 : i32
    %c0_i32_0 = arith.constant 0 : i32
    %c0_i32_1 = arith.constant 0 : i32
    %c0_i32_2 = arith.constant 0 : i32
    return %c0_i32, %c0_i32_0, %arg0, %c0_i32_1 : i32, i32, i32, i32
  }
  func.func @transform_3(%arg0: i32) -> (i32, i32, i32) {
    %c0_i32 = arith.constant 0 : i32
    %c0_i32_0 = arith.constant 0 : i32
    %c0_i32_1 = arith.constant 0 : i32
    return %arg0, %c0_i32, %c0_i32_0 : i32, i32, i32
  }
}

</mosaic_0001>

<bundles_post_ra>
// kernel: tpu_custom_call.1
= control target key start
LH: loop header
LB: loop body
LE: loop exit
PB: predicated region body
PF: predicated region fallthrough
CT: control target
= control target key end

     0   :  { %s2546_s0 = inlined_call_operand.hbm [shape: f32[4,4,16,16], index: 0, kind: input, shape index: {}]   ;;  %s2547_s1 = inlined_call_operand.hbm [shape: f32[4,4,16,16], index: 1, kind: input, shape index: {}]   ;;  %s2548_s2 = inlined_call_operand.hbm [shape: s8[4,4,16,16], index: 2, kind: input, shape index: {}]   ;;  %s2549_s3 = inlined_call_operand.hbm [shape: f32[2,8,128], index: 3, kind: output, shape index: {}]  }
   0x1   :  { %2575 = sst [smem:[#allocation16_spill]] %s2546_s0 }
   0x2   :  { %2576 = sst [smem:[#allocation17_spill]] %s2547_s1 }
   0x3   :  { %8 = vsyncpa [#allocation3], 0 }
   0x4   :  { %10 = vsyncpa [#allocation3 + $0x1], 0 }
   0x5   :  { %11 = vsyncpa [#allocation6], 0 }
   0x6   :  { %13 = vsyncpa [#allocation6 + $0x1], 0 }
   0x7   :  { %14 = vsyncpa [#allocation4], 0 }
   0x8   :  { %16 = vsyncpa [#allocation4 + $0x1], 0  ;;  %s1325_s12 = smov 0   ;;  %s1327_s13 = smov 0  }
   0x9   :  { %s1329_s14 = smov 0   ;;  %s1331_s15 = smov 0  }
   0xa LB: > { %s1346_s16 = sadd.s32 4294967295, %s1291_s15   ;;  %s1009_s17 = sadd.s32 4294967294, %s1291_s15   ;;  %s1291_s15 = sphi %s1331_s15, %s2740_s15   ;;  %s1287_s14 = sphi %s1329_s14, %s2739_s14   ;;  %s1283_s13 = sphi %s1327_s13, %s2738_s13   ;;  %s1279_s12 = sphi %s1325_s12, %s2737_s12  }
   0xb   : > { %s1350_s18 = sadd.s32 1, %s1291_s15   ;;  %s29_s19 = sadd.s32 1, %s1287_s14 }
   0xc   : > { %s26_s20 = ssub.s32 %s1291_s15, %s1350_s18  ;;  %p36_p0 = scmp.ne.s32.totalorder %s1287_s14, %s1283_s13 }
   0xd   : > { %p27_p1 = scmp.eq.s32.totalorder %s26_s20, 0  ;;  %p37_p2 = scmp.eq.s32.totalorder %s1291_s15, 0 }
   0xe   : > { %p42_p3 = scmp.ne.s32.totalorder %s1283_s13, %s1279_s12  ;;  %p43_p4 = scmp.eq.s32.totalorder %s1346_s16, 0 }
   0xf   : > { %s1362_s21 = scalar_select %p27_p1, %s1287_s14, %s29_s19  }
  0x10   : > { %p38_p5 = por %p37_p2, %p36_p0  ;;  %p1364_p6 = por %p43_p4, %p42_p3 }
  0x11   : > { %p118_p7 = scmp.eq.s32.totalorder %s1346_s16, 1  ;;  %p124_p8 = scmp.eq.s32.totalorder %s1009_s17, 1 }
  0x12   : > { %s2577_s22 = scalar_select %p1364_p6, 1, 0 }
  0x13   : > { %p1089_p10 = scmp.lt.s32.totalorder %s1291_s15, 2  ;;  %p1371_p11 = por %p118_p7, %p36_p0 }
  0x14   : > { %p1375_p12 = por %p124_p8, %p42_p3  ;;  %s1380_s25 = sand.u32 1, %s1287_s14  }
  0x15   : > { %s2578_s23 = scalar_select %p1371_p11, 1, 0 }
  0x16   : > { %s2579_s24 = scalar_select %p1375_p12, 1, 0 }
  0x17   : > { %s1013_s26 = sshll.u32 %s1291_s15, 7  ;;  %s1012_s27 = sshll.u32 %s1380_s25, 7 }
  0x18   : > { %p1384_p13 = pnand %p1089_p10, %p38_p5  ;;  %s164_s29 = sand.u32 1, %s1291_s15  }
  0x19   : > { %s2581_s1 = sld [smem:[#allocation17_spill]]  ;;  %s168_s6 = scalar_lea.vmem [#allocation5], %s1012_s27 }
  0x1a   : > { %s174_s7 = sshll.u32 %s168_s6, 4  ;;  %s1402_s8 = scalar_lea.sflag [#allocation6], %s164_s29  ;;  %s1399_s7 = int_to_ptr.vmem [resolvable:$true] %s174_s7 }
  0x1b   : > { %p1408_p3 = pneg %p1384_p13 }
  0x1f   : > { %s1394_s5 = scalar_lea.hbm %s2581_s1, %s1013_s26  ;;  %s1136_s19 = scalar_lea.hbm %s2581_s1, 4096 }
  0x20   : > { %s1131_s9 = scalar_lea.hbm %s1394_s5, 2048  ;;  %p1137_p7 = scmp.lt.u32.totalorder %s1394_s5, %s2581_s1 }
  0x21   : > { %p1132_p2 = scmp.ne.s32.totalorder %s1394_s5, %s1131_s9  ;;  %p1138_p8 = scmp.lt.u32.totalorder %s1136_s19, %s1131_s9 }
  0x22   : > { %p1140_p9 = scmp.lt.u32.totalorder %s1131_s9, %s1394_s5 }
  0x23   : > { %p1134_p4 = pnand %p1408_p3, %p1132_p2  ;;  %p1139_p10 = por %p1138_p8, %p1137_p7 }
  0x25   : > { %p1135_p5 = pneg %p1134_p4  ;;  %p1141_p0 = por %p1140_p9, %p1139_p10 }
  0x27   : > { %p1142_p1 = pnand %p1141_p0, %p1135_p5 }
  0x29   : > { %1145 = shalt.err (!%p1142_p1)
}
  0x2a   : > { %s1146_s29 = scalar_lea.vmem %s1399_s7, 2048  ;;  %s1293_s4 = smov [#allocation5]  }
  0x2b   : > { %p1147_p2 = scmp.ne.s32.totalorder %s1399_s7, %s1146_s29  ;;  %s1151_s6 = sshll.u32 %s1293_s4, 4  ;;  %s1152_s6 = int_to_ptr.vmem [resolvable:$false] %s1151_s6 }
  0x2c   : > { %s1153_s11 = scalar_lea.vmem %s1152_s6, 4096  ;;  %p1154_p11 = scmp.lt.s32.totalorder %s1399_s7, %s1152_s6 }
  0x2d   : > { %p1149_p4 = pnand %p1147_p2, %p1408_p3  ;;  %p1155_p6 = scmp.lt.s32.totalorder %s1153_s11, %s1146_s29 }
  0x2f   : > { %p1150_p12 = pneg %p1149_p4  ;;  %p1156_p7 = por %p1155_p6, %p1154_p11 }
  0x31   : > { %p1157_p8 = pnand %p1156_p7, %p1150_p12 }
  0x33   : > { %1160 = shalt.err (!%p1157_p8)
}
  0x34   : > { %s2552_s9 = smov 256   ;;  %s2553_s17 = smov 128  }
  0x35   : > { %s2554_s19 = smov 8   ;;  %p2583_p6 = scmp.lt.s32.totalorder %s1291_s15, 3 }
  0x36   : > { %1081 = dma.hbm_to_vmem [thread:$0]  (!%p1384_p13), %s1394_s5, 2048, %s1399_s7, %s1402_s8, %s2552_s9, %s2553_s17, %s2554_s19  }
  0x37   : > { %p2584_p9 = scmp.ge.s32.totalorder %s1291_s15, 1  ;;  %s2586_s0 = sld [smem:[#allocation16_spill]] }
  0x38   : > { %s148_s6 = scalar_lea.vmem [#allocation2], %s1012_s27  ;;  %s1016_s5 = sshll.u32 %s1380_s25, 5 }
  0x39   : > { %p1439_p11 = pnand %p2584_p9, %p2583_p6  ;;  %s154_s11 = sshll.u32 %s148_s6, 4  ;;  %s1453_s11 = int_to_ptr.vmem [resolvable:$true] %s154_s11 }
  0x3a   : > { %s145_s7 = scalar_lea.sflag [#allocation3], %s1380_s25 }
  0x3b   : > { %s2585_s20 = scalar_select %p1439_p11, 1, 0 }
  0x3d   : > { %s1448_s4 = scalar_lea.hbm %s2586_s0, %s1013_s26  ;;  %s1166_s26 = scalar_lea.hbm %s2586_s0, 4096 }
  0x3e   : > { %s1161_s9 = scalar_lea.hbm %s1448_s4, 2048  ;;  %p1167_p5 = scmp.lt.u32.totalorder %s1448_s4, %s2586_s0 }
  0x3f   : > { %p1162_p12 = scmp.ne.s32.totalorder %s1448_s4, %s1161_s9  ;;  %p1168_p10 = scmp.lt.u32.totalorder %s1166_s26, %s1161_s9 }
  0x40   : > { %p1170_p4 = scmp.lt.u32.totalorder %s1161_s9, %s1448_s4 }
  0x41   : > { %p1164_p0 = pnand %p1162_p12, %p1408_p3  ;;  %p1169_p2 = por %p1168_p10, %p1167_p5 }
  0x43   : > { %p1165_p1 = pneg %p1164_p0  ;;  %p1171_p7 = por %p1170_p4, %p1169_p2 }
  0x45   : > { %p1172_p8 = pnand %p1171_p7, %p1165_p1 }
  0x47   : > { %1175 = shalt.err (!%p1172_p8)
}
  0x48   : > { %s1176_s27 = scalar_lea.vmem %s1453_s11, 2048  ;;  %s1297_s17 = smov [#allocation2]  }
  0x49   : > { %p1177_p6 = scmp.ne.s32.totalorder %s1453_s11, %s1176_s27  ;;  %s1181_s6 = sshll.u32 %s1297_s17, 4  ;;  %s1182_s6 = int_to_ptr.vmem [resolvable:$false] %s1181_s6 }
  0x4a   : > { %s1183_s19 = scalar_lea.vmem %s1182_s6, 4096  ;;  %p1184_p0 = scmp.lt.s32.totalorder %s1453_s11, %s1182_s6 }
  0x4b   : > { %p1179_p9 = pnand %p1177_p6, %p1408_p3  ;;  %p1185_p11 = scmp.lt.s32.totalorder %s1183_s19, %s1176_s27 }
  0x4d   : > { %p1180_p12 = pneg %p1179_p9  ;;  %p1186_p5 = por %p1185_p11, %p1184_p0 }
  0x4f   : > { %p1187_p10 = pnand %p1186_p5, %p1180_p12 }
  0x51   : > { %1190 = shalt.err (!%p1187_p10)
}
  0x52   : > { %s2587_s9 = smov 8   ;;  %s2588_s30 = smov 128  }
  0x53   : > { %s2589_s26 = smov 256   ;;  %s1017_s29 = sshll.u32 %s1291_s15, 5 }
  0x54   : > { %1078 = dma.hbm_to_vmem [thread:$0]  (!%p1384_p13), %s1448_s4, 2048, %s1453_s11, %s145_s7, %s2589_s26, %s2588_s30, %s2587_s9  }
  0x55   : > { %s188_s17 = scalar_lea.vmem [#allocation7], %s1016_s5  ;;  %s1488_s0 = scalar_lea.hbm %s2548_s2, %s1017_s29 }
  0x56   : > { %s194_s27 = sshll.u32 %s188_s17, 4  ;;  %s1191_s1 = scalar_lea.hbm %s1488_s0, 512  ;;  %s1490_s27 = int_to_ptr.vmem [resolvable:$true] %s194_s27 }
  0x57   : > { %p1192_p11 = scmp.ne.s32.totalorder %s1488_s0, %s1191_s1  ;;  %s1196_s11 = scalar_lea.hbm %s2548_s2, 1024 }
  0x58   : > { %p1197_p4 = scmp.lt.u32.totalorder %s1488_s0, %s2548_s2  ;;  %p1198_p7 = scmp.lt.u32.totalorder %s1196_s11, %s1191_s1 }
  0x59   : > { %p1194_p1 = pnand %p1192_p11, %p1408_p3  ;;  %p1200_p6 = scmp.lt.u32.totalorder %s1191_s1, %s1488_s0 }
  0x5a   : > { %p1199_p8 = por %p1198_p7, %p1197_p4 }
  0x5b   : > { %p1195_p2 = pneg %p1194_p1 }
  0x5c   : > { %p1201_p9 = por %p1200_p6, %p1199_p8 }
  0x5e   : > { %p1202_p12 = pnand %p1201_p9, %p1195_p2 }
  0x60   : > { %1205 = shalt.err (!%p1202_p12)
}
  0x61   : > { %s1206_s9 = scalar_lea.vmem %s1490_s27, 512  ;;  %s1298_s30 = smov [#allocation7]  }
  0x62   : > { %p1207_p0 = scmp.ne.s32.totalorder %s1490_s27, %s1206_s9  ;;  %s1211_s26 = sshll.u32 %s1298_s30, 4  ;;  %s1212_s26 = int_to_ptr.vmem [resolvable:$false] %s1211_s26 }
  0x63   : > { %s1213_s29 = scalar_lea.vmem %s1212_s26, 1024  ;;  %p1214_p11 = scmp.lt.s32.totalorder %s1490_s27, %s1212_s26 }
  0x64   : > { %p1209_p5 = pnand %p1207_p0, %p1408_p3  ;;  %p1215_p1 = scmp.lt.s32.totalorder %s1213_s29, %s1206_s9 }
  0x66   : > { %p1210_p10 = pneg %p1209_p5  ;;  %p1216_p4 = por %p1215_p1, %p1214_p11 }
  0x68   : > { %p1217_p7 = pnand %p1216_p4, %p1210_p10 }
  0x6a   : > { %1220 = shalt.err (!%p1217_p7)
}
  0x6b   : > { %s1299_s1 = smov 64   ;;  %s1300_s17 = smov 32  }
  0x6c   : > { %s1301_s6 = smov 2   ;;  %p2590_p3 = scmp.ne.s32.totalorder %s2585_s20, 0 }
  0x6d   : > { %1084 = dma.hbm_to_vmem [thread:$0]  (!%p1384_p13), %s1488_s0, 512, %s1490_s27, %s1402_s8, %s1299_s1, %s1300_s17, %s1301_s6  }
  0x6e   : > { %206 = sbr.rel (%p2590_p3) target bundleno = 480 (0x1e0), region = 32 }
  0x75   : > { %s1517_s10 = sand.u32 1, %s1283_s13   ;;  %p2591_p2 = scmp.ne.s32.totalorder %s2577_s22, 0 }
  0x76   : > { %s1019_s19 = sshll.u32 %s1517_s10, 7  ;;  %s209_s4 = scalar_lea.sflag [#allocation3], %s1517_s10 }
  0x77   : > { %s1521_s25 = scalar_lea.vmem [#allocation2], %s1019_s19 }
  0x78   : > { %1266 = dma.done.wait (%p2591_p2), %s209_s4, 2048  }
  0x79   : > { %1268 = vsyncadd (%p2591_p2), %s209_s4, 4294965248  ;;  %s217_s0 = sand.u32 1, %s1346_s16   ;;  %s1528_s8 = scalar_lea.vmem [#allocation5], %s1019_s19 }
  0x7a   : > { %s218_s28 = scalar_lea.sflag [#allocation6], %s217_s0 }
  0x7b   : > { %1270 = dma.done.wait (%p2591_p2), %s218_s28, 2560  }
  0x7c   : > { %1272 = vsyncadd (%p2591_p2), %s218_s28, 4294964736  ;;  %v1535_v0 = vld [vmem:[%s1528_s8] sm:$0xff]  ;;  %v1538_v1 = vld [vmem:[%s1528_s8 + $0x8] sm:$0xff]  ;;  %s1021_s22 = sshll.u32 %s1517_s10, 5  ;;  %v2602_v17 = vmov 0  ;;  %v2604_v19 = vmov 0  ;;  %v329_v34 = vlaneseq }
  0x7d   : > { %v1541_v2 = vld [vmem:[%s1528_s8 + $0x10] sm:$0xff]  ;;  %v1544_v3 = vld [vmem:[%s1528_s8 + $0x18] sm:$0xff]  ;;  %vm334_vm0 = vcmp.gt.f32.partialorder %v1535_v0, -1.0  ;;  %v1548_v4 = vld [vmem:[%s1528_s8 + $0x20] sm:$0xff]  ;;  %vm335_vm1 = vcmp.gt.f32.partialorder %v1538_v1, -1.0  ;;  %v2606_v21 = vmov 0 }
  0x7e   : > { %v1552_v5 = vld [vmem:[%s1528_s8 + $0x28] sm:$0xff]  ;;  %vm336_vm2 = vcmp.gt.f32.partialorder %v1541_v2, -1.0  ;;  %v1556_v6 = vld [vmem:[%s1528_s8 + $0x30] sm:$0xff]  ;;  %vm337_vm3 = vcmp.gt.f32.partialorder %v1544_v3, -1.0  ;;  %vm1559_vm4 = vmpackc.low %vm334_vm0, %vm334_vm0  ;;  %vm338_vm5 = vcmp.gt.f32.partialorder %v1548_v4, -1.0  ;;  %v2610_v25 = vmov 0 }
  0x7f   : > { %v1564_v8 = vld [vmem:[%s1528_s8 + $0x38] sm:$0xff]  ;;  %vm1567_vm6 = vmpackc.low %vm335_vm1, %vm335_vm1  ;;  %v1572_v10 = vld [vmem:[%s1528_s8 + $0x40] sm:$0xff]  ;;  %vm339_vm7 = vcmp.gt.f32.partialorder %v1552_v5, -1.0  ;;  %vm340_vm9 = vcmp.gt.f32.partialorder %v1556_v6, -1.0  ;;  %s1654_s20 = scalar_lea.vmem [#allocation7], %s1021_s22  ;;  %v2613_v28 = vmov 0 }
  0x80   : > { %vm1575_vm8 = vmpackc.low %vm336_vm2, %vm336_vm2  ;;  %v1580_v12 = vld [vmem:[%s1528_s8 + $0x48] sm:$0xff]  ;;  %v1589_v14 = vld [vmem:[%s1528_s8 + $0x50] sm:$0xff]  ;;  %vm341_vm11 = vcmp.gt.f32.partialorder %v1564_v8, -1.0  ;;  %vm342_vm13 = vcmp.gt.f32.partialorder %v1572_v10, -1.0  ;;  %v2623_v45 = vmov 0  ;;  %v2626_v49 = vmov 0 }
  0x81   : > { %vm1583_vm10 = vmpackc.low %vm337_vm3, %vm337_vm3  ;;  %v1597_v16 = vld [vmem:[%s1528_s8 + $0x58] sm:$0xff]  ;;  %v1608_v18 = vld [vmem:[%s1528_s8 + $0x60] sm:$0xff]  ;;  %vm343_vm0 = vcmp.gt.f32.partialorder %v1580_v12, -1.0  ;;  %v1757_v51 = vshrl.u32 %v329_v34, 7  ;;  %v1759_v52 = vand.u32 127, %v329_v34  ;;  %v1302_v60 = vmov 0  }
  0x82   : > { %vm1592_vm12 = vmpackc.low %vm338_vm5, %vm338_vm5  ;;  %v1619_v20 = vld [vmem:[%s1528_s8 + $0x68] sm:$0xff]  ;;  %v1630_v22 = vld [vmem:[%s1528_s8 + $0x70] sm:$0xff]  ;;  %s1022_s26 = sshll.u32 %s1517_s10, 3  ;;  %s1042_s19 = sshll.u32 %s1346_s16, 7 }
  0x83   : > { %vm1603_vm15 = vmpackc.low %vm339_vm7, %vm339_vm7  ;;  %v1641_v24 = vld [vmem:[%s1528_s8 + $0x78] sm:$0xff]  ;;  %v1652_v26 = vld [vmem:[%s1521_s25] sm:$0xff]  ;;  %2628 = vst [vmem:[#allocation12_spill] sm:$0xff] %v1757_v51  ;;  %s262_s4 = scalar_lea.vmem [#allocation8], %s1022_s26  ;;  %s2502_s22 = scalar_lea.hbm %s2549_s3, %s1042_s19 }
  0x84   : > { %v2603_v17 = vsel %vm1603_vm15, 4294967295, %v2602_v17  ;;  %vm1614_vm2 = vmpackc.low %vm340_vm9, %vm340_vm9  ;;  %vm345_vm9 = vcmp.gt.f32.partialorder %v1597_v16, -1.0  ;;  %v297_v27 = vld [vmem:[%s1654_s20] sm:$0x3]  ;;  %v1669_v29 = vld [vmem:[%s1521_s25 + $0x8] sm:$0xff]  ;;  %vm2619_vm15 = vcmp.gt.f32.partialorder %v1619_v20, -1.0  ;;  %v2711_v51 = vsub.f32 %v1652_v26, %v1535_v0 }
  0x85   : > { %v2605_v19 = vsel %vm1614_vm2, 4294967295, %v2604_v19  ;;  %vm1625_vm7 = vmpackc.low %vm341_vm11, %vm341_vm11  ;;  %vm346_vm11 = vcmp.gt.f32.partialorder %v1608_v18, -1.0  ;;  %v1672_v30 = vld [vmem:[%s1521_s25 + $0x10] sm:$0xff]  ;;  %v1675_v31 = vld [vmem:[%s1521_s25 + $0x18] sm:$0xff]  ;;  %vm2625_vm2 = vcmp.gt.f32.partialorder %v1641_v24, -1.0  ;;  %2629 = vst [vmem:[#allocation13_spill] sm:$0xff] %v1759_v52 }
  0x86   : > { %v2607_v21 = vsel %vm1625_vm7, 4294967295, %v2606_v21  ;;  %vm1636_vm14 = vmpackc.low %vm342_vm13, %vm342_vm13  ;;  %v298_v32 = vld [vmem:[%s1654_s20 + $0x2] sm:$0x3]  ;;  %v1693_v36 = vld [vmem:[%s1521_s25 + $0x28] sm:$0xff]  ;;  %vm2622_vm7 = vcmp.gt.f32.partialorder %v1630_v22, -1.0  ;;  %v2716_v26 = vsub.f32 %v1675_v31, %v1544_v3  ;;  %s883_s16 = scalar_lea.sflag [#allocation4], %s1517_s10 }
  0x87   : > { %vm1647_vm3 = vmpackc.low %vm343_vm0, %vm343_vm0  ;;  %vm2612_vm0 = vcmp.gt.f32.partialorder %v1589_v14, -1.0  ;;  %v1690_v35 = vld [vmem:[%s1521_s25 + $0x20] sm:$0xff]  ;;  %v1708_v39 = vld [vmem:[%s1521_s25 + $0x30] sm:$0xff]  ;;  %p2734_p8 = scmp.ne.s32.totalorder %s2578_s23, 0 }
  0x88   : > { %v2611_v25 = vsel %vm1647_vm3, 4294967295, %v2610_v25  ;;  %vm1664_vm1 = vmpackc.low %vm2612_vm0, %vm2612_vm0  ;;  %v299_v37 = vld [vmem:[%s1654_s20 + $0x4] sm:$0x3]  ;;  %v1711_v40 = vld [vmem:[%s1521_s25 + $0x38] sm:$0xff]  ;;  %v2719_v3 = vsub.f32 %v1708_v39, %v1556_v6 }
  0x89   : > { %v2614_v28 = vsel %vm1664_vm1, 4294967295, %v2613_v28  ;;  %vm1685_vm0 = vmpackc.low %vm345_vm9, %vm345_vm9  ;;  %v300_v41 = vld [vmem:[%s1654_s20 + $0x6] sm:$0x3]  ;;  %v301_v44 = vld [vmem:[%s1654_s20 + $0x8] sm:$0x3] }
  0x8a   : > { %vm1703_vm9 = vmpackc.low %vm346_vm11, %vm346_vm11  ;;  %v1725_v43 = vld [vmem:[%s1521_s25 + $0x40] sm:$0xff]  ;;  %v1739_v46 = vld [vmem:[%s1521_s25 + $0x48] sm:$0xff] }
  0x8b   : > { %vm1720_vm5 = vmpackc.low %vm2619_vm15, %vm2619_vm15  ;;  %v1742_v47 = vld [vmem:[%s1521_s25 + $0x50] sm:$0xff]  ;;  %v302_v48 = vld [vmem:[%s1654_s20 + $0xa] sm:$0x3]  ;;  %vm2631_vm15 = vnez %v297_v27  ;;  %v2723_v39 = vsub.f32 %v1739_v46, %v1580_v12 }
  0x8c   : > { %vm1734_vm13 = vmpackc.low %vm2622_vm7, %vm2622_vm7  ;;  %v1762_v53 = vld [vmem:[%s1521_s25 + $0x58] sm:$0xff]  ;;  %v303_v54 = vld [vmem:[%s1654_s20 + $0xc] sm:$0x3] }
  0x8d   : > { %v2624_v45 = vsel %vm1734_vm13, 4294967295, %v2623_v45  ;;  %vm1751_vm3 = vmpackc.low %vm2625_vm2, %vm2625_vm2  ;;  %v1781_v58 = vld [vmem:[%s1521_s25 + $0x60] sm:$0xff]  ;;  %v304_v59 = vld [vmem:[%s1654_s20 + $0xe] sm:$0x3]  ;;  %vm317_vm2 = vnez %v301_v44 }
  0x8e   : > { %v2627_v49 = vsel %vm1751_vm3, 4294967295, %v2626_v49  ;;  %vm2630_vm11 = vmpackc.even %vm1559_vm4, %vm1559_vm4  ;;  %v305_v7 = vld [vmem:[%s1654_s20 + $0x10] sm:$0x3]  ;;  %v306_v27 = vld [vmem:[%s1654_s20 + $0x12] sm:$0x3]  ;;  %vm318_vm4 = vnez %v302_v48  ;;  %vm2663_vm3 = vnez %v2611_v25 }
  0x8f   : > { %vm382_vm1 = vmand %vm2631_vm15, %vm2630_vm11  ;;  %vm2633_vm15 = vnez %v298_v32  ;;  %v1815_v63 = vld [vmem:[%s1521_s25 + $0x68] sm:$0xff]  ;;  %v307_v62 = vld [vmem:[%s1654_s20 + $0x14] sm:$0x3] }
  0x90   : > { %vm2632_vm11 = vmpackc.even %vm1567_vm6, %vm1567_vm6  ;;  %v398_v61 = vsel %vm382_vm1, 16843009, %v1302_v60  ;;  %vm319_vm6 = vnez %v303_v54  ;;  %v308_v57 = vld [vmem:[%s1654_s20 + $0x16] sm:$0x3]  ;;  %v309_v56 = vld [vmem:[%s1654_s20 + $0x18] sm:$0x3] }
  0x91   : > { %vm383_vm7 = vmand %vm2633_vm15, %vm2632_vm11  ;;  %vm2635_vm11 = vnez %v299_v37  ;;  %v414_v34 = vunpack.c.0.s8 %v398_v61  ;;  %v1854_v55 = vld [vmem:[%s1521_s25 + $0x70] sm:$0xff]  ;;  %v310_v50 = vld [vmem:[%s1654_s20 + $0x1a] sm:$0x3]  ;;  %v2721_v54 = vmov 0.0  }
  0x92   : > { %vm2634_vm1 = vmpackc.even %vm1575_vm8, %vm1575_vm8  ;;  %v399_v9 = vsel %vm383_vm7, 16843009, %v1302_v60  ;;  %vm320_vm8 = vnez %v304_v59  ;;  %v311_v32 = vld [vmem:[%s1654_s20 + $0x1c] sm:$0x3]  ;;  %v312_v61 = vld [vmem:[%s1654_s20 + $0x1e] sm:$0x3]  ;;  %v2726_v12 = vsub.f32 %v1854_v55, %v1630_v22 }
  0x93   : > { %vm384_vm15 = vmand %vm2635_vm11, %vm2634_vm1  ;;  %vm2637_vm1 = vnez %v300_v41  ;;  %v415_v41 = vunpack.c.0.s8 %v399_v9  ;;  %v1890_v52 = vld [vmem:[%s1521_s25 + $0x78] sm:$0xff]  ;;  %s896_s25 = sshll.u32 %s262_s4, 4  ;;  %s2504_s25 = int_to_ptr.vmem [resolvable:$true] %s896_s25 }
  0x94   : > { %vm2636_vm7 = vmpackc.even %vm1583_vm10, %vm1583_vm10  ;;  %v400_v37 = vsel %vm384_vm15, 16843009, %v1302_v60  ;;  %vm2651_vm10 = vnez %v2607_v21  ;;  %s1221_s20 = scalar_lea.vmem %s2504_s25, 128 }
  0x95   : > { %vm1827_vm11 = vmand %vm2637_vm1, %vm2636_vm7  ;;  %vm2647_vm1 = vnez %v2605_v19  ;;  %v416_v11 = vunpack.c.0.s8 %v400_v37  ;;  %p1222_p13 = scmp.ne.s32.totalorder %s2504_s25, %s1221_s20 }
  0x96   : > { %vm2640_vm7 = vmpackc.even %vm1592_vm12, %vm1592_vm12  ;;  %vm2643_vm12 = vnez %v2603_v17  ;;  %v401_v44 = vsel %vm1827_vm11, 16843009, %v1302_v60  ;;  %vm2658_vm11 = vnez %v305_v7 }
  0x97   : > { %vm1845_vm15 = vmand %vm317_vm2, %vm2640_vm7  ;;  %p1223_p6 = pnand %p1222_p13, %p2734_p8 }
  0x98   : > { %vm2644_vm2 = vmpackc.even %vm2643_vm12, %vm2643_vm12  ;;  %v402_v48 = vsel %vm1845_vm15, 16843009, %v1302_v60  ;;  %vm2670_vm15 = vnez %v307_v62 }
  0x99   : > { %vm1863_vm7 = vmand %vm318_vm4, %vm2644_vm2  ;;  %v418_v7 = vunpack.c.0.s8 %v402_v48  ;;  %p1224_p9 = pneg %p1223_p6 }
  0x9a   : > { %vm2648_vm12 = vmpackc.even %vm2647_vm1, %vm2647_vm1  ;;  %v403_v59 = vsel %vm1863_vm7, 16843009, %v1302_v60  ;;  %vm2668_vm7 = vnez %v2614_v28 }
  0x9b   : > { %vm1880_vm4 = vmand %vm319_vm6, %vm2648_vm12  ;;  %vm1902_vm12 = vcmp.ne.s32.totalorder %v414_v34, 0  ;;  %v417_v34 = vunpack.c.0.s8 %v401_v44  ;;  %v419_v48 = vunpack.c.0.s8 %v403_v59 }
  0x9c   : > { %vm2652_vm6 = vmpackc.even %vm2651_vm10, %vm2651_vm10  ;;  %v404_v25 = vsel %vm1880_vm4, 16843009, %v1302_v60 }
  0x9d   : > { %vm1898_vm1 = vmand %vm320_vm8, %vm2652_vm6  ;;  %vm1921_vm8 = vcmp.ne.s32.totalorder %v415_v41, 0  ;;  %v2573_v41 = vmov 0.0   ;;  %v420_v59 = vunpack.c.0.s8 %v404_v25 }
  0x9e   : > { %vm2657_vm2 = vmpackc.even %vm1636_vm14, %vm1636_vm14  ;;  %v1953_v44 = vsel %vm1902_vm12, 1.0, %v2573_v41  ;;  %v405_v62 = vsel %vm1898_vm1, 16843009, %v1302_v60  ;;  %vm1984_vm1 = vcmp.ne.s32.totalorder %v417_v34, 0 }
  0x9f   : > { %vm1914_vm10 = vmand %vm2658_vm11, %vm2657_vm2  ;;  %vm2665_vm11 = vnez %v306_v27  ;;  %v2015_v37 = vsel %vm1984_vm1, 1.0, %v2573_v41  ;;  %v2729_v27 = vsub.f32 %v1815_v63, %v1619_v20 }
  0xa0   : > { %vm2664_vm14 = vmpackc.even %vm2663_vm3, %vm2663_vm3  ;;  %vm1946_vm3 = vcmp.ne.s32.totalorder %v416_v11, 0  ;;  %v406_v17 = vsel %vm1914_vm10, 16843009, %v1302_v60  ;;  %v1972_v11 = vsel %vm1921_vm8, 1.0, %v2573_v41  ;;  %vm2680_vm10 = vnez %v310_v50 }
  0xa1   : > { %vm1931_vm2 = vmand %vm2665_vm11, %vm2664_vm14  ;;  %vm2676_vm14 = vnez %v309_v56  ;;  %v1991_v21 = vsel %vm1946_vm3, 1.0, %v2573_v41  ;;  %v421_v50 = vunpack.c.0.s8 %v405_v62  ;;  %v422_v23 = vunpack.c.0.s8 %v406_v17 }
  0xa2   : > { %vm2669_vm6 = vmpackc.even %vm2668_vm7, %vm2668_vm7  ;;  %v407_v33 = vsel %vm1931_vm2, 16843009, %v1302_v60  ;;  %vm2683_vm2 = vnez %v2624_v45 }
  0xa3   : > { %vm392_vm13 = vmand %vm2670_vm15, %vm2669_vm6  ;;  %vm2674_vm6 = vnez %v308_v57 }
  0xa4   : > { %vm2673_vm15 = vmpackc.even %vm1685_vm0, %vm1685_vm0  ;;  %v408_v57 = vsel %vm392_vm13, 16843009, %v1302_v60  ;;  %vm2001_vm13 = vcmp.ne.s32.totalorder %v418_v7, 0 }
  0xa5   : > { %vm393_vm4 = vmand %vm2674_vm6, %vm2673_vm15  ;;  %vm2685_vm6 = vnez %v311_v32  ;;  %v423_v32 = vunpack.c.0.s8 %v407_v33  ;;  %v424_v7 = vunpack.c.0.s8 %v408_v57  ;;  %v2032_v28 = vsel %vm2001_vm13, 1.0, %v2573_v41 }
  0xa6   : > { %vm2675_vm0 = vmpackc.even %vm1703_vm9, %vm1703_vm9  ;;  %v409_v38 = vsel %vm393_vm4, 16843009, %v1302_v60  ;;  %v671_v57 = vmul.f32 %v2015_v37, %v1972_v11 }
  0xa7   : > { %vm394_vm11 = vmand %vm2676_vm14, %vm2675_vm0  ;;  %vm2688_vm14 = vnez %v312_v61  ;;  %v425_v17 = vunpack.c.0.s8 %v409_v38 }
  0xa8   : > { %vm2679_vm9 = vmpackc.even %vm1720_vm5, %vm1720_vm5  ;;  %v410_v56 = vsel %vm394_vm11, 16843009, %v1302_v60  ;;  %vm2686_vm5 = vnez %v2627_v49 }
  0xa9   : > { %vm395_vm7 = vmand %vm2680_vm10, %vm2679_vm9  ;;  %vm2024_vm9 = vcmp.ne.s32.totalorder %v419_v48, 0  ;;  %v426_v9 = vunpack.c.0.s8 %v410_v56  ;;  %vm2034_vm10 = vcmp.ne.s32.totalorder %v420_v59, 0 }
  0xaa   : > { %vm2684_vm15 = vmpackc.even %vm2683_vm2, %vm2683_vm2  ;;  %v411_v42 = vsel %vm395_vm7, 16843009, %v1302_v60  ;;  %v2041_v48 = vsel %vm2024_vm9, 1.0, %v2573_v41  ;;  %vm2043_vm7 = vcmp.ne.s32.totalorder %v421_v50, 0  ;;  %vm2047_vm2 = vcmp.ne.s32.totalorder %v422_v23, 0 }
  0xab   : > { %vm396_vm0 = vmand %vm2685_vm6, %vm2684_vm15  ;;  %v427_v49 = vunpack.c.0.s8 %v411_v42  ;;  %v2054_v38 = vsel %vm2034_vm10, 1.0, %v2573_v41  ;;  %vm2056_vm15 = vcmp.ne.s32.totalorder %v423_v32, 0  ;;  %vm2060_vm6 = vcmp.ne.s32.totalorder %v424_v7, 0 }
  0xac   : > { %vm2687_vm4 = vmpackc.even %vm2686_vm5, %vm2686_vm5  ;;  %v412_v45 = vsel %vm396_vm0, 16843009, %v1302_v60  ;;  %v2067_v42 = vsel %vm2043_vm7, 1.0, %v2573_v41  ;;  %v2072_v50 = vsel %vm2047_vm2, 1.0, %v2573_v41  ;;  %vm2074_vm0 = vcmp.ne.s32.totalorder %v425_v17, 0 }
  0xad   : > { %vm397_vm11 = vmand %vm2688_vm14, %vm2687_vm4  ;;  %v428_v61 = vunpack.c.0.s8 %v412_v45  ;;  %vm2078_vm5 = vcmp.ne.s32.totalorder %v426_v9, 0  ;;  %v2085_v32 = vsel %vm2056_vm15, 1.0, %v2573_v41  ;;  %v2090_v7 = vsel %vm2060_vm6, 1.0, %v2573_v41 }
  0xae   : > { %v413_v62 = vsel %vm397_vm11, 16843009, %v1302_v60  ;;  %2705 = vst [vmem:[#allocation14_spill] sm:$0xff] %v2085_v32  ;;  %2706 = vst [vmem:[#allocation15_spill] sm:$0xff] %v2090_v7  ;;  %vm2092_vm4 = vcmp.ne.s32.totalorder %v427_v49, 0  ;;  %v2103_v9 = vsel %vm2074_vm0, 1.0, %v2573_v41  ;;  %v2715_v41 = vsub.f32 %v1672_v30, %v1541_v2 }
  0xaf   : > { %v429_v33 = vunpack.c.0.s8 %v413_v62  ;;  %vm2096_vm14 = vcmp.ne.s32.totalorder %v428_v61, 0  ;;  %v2110_v32 = vsel %vm1902_vm12, %v2711_v51, 0.0  ;;  %v2714_v61 = vsub.f32 %v1669_v29, %v1538_v1 }
  0xb0   : > { %v2128_v0 = vsel %vm1946_vm3, %v2715_v41, 0.0  ;;  %v2135_v51 = vsel %vm1984_vm1, %v2716_v26, 0.0  ;;  %v2717_v1 = vsub.f32 %v1690_v35, %v1548_v4  ;;  %v2718_v2 = vsub.f32 %v1693_v36, %v1552_v5 }
  0xb1   : > { %vm2112_vm11 = vcmp.ne.s32.totalorder %v429_v33, 0  ;;  %v2121_v7 = vsel %vm1921_vm8, %v2714_v61, 0.0  ;;  %v2156_v31 = vsel %vm2034_vm10, %v2719_v3, 0.0  ;;  %v2720_v4 = vsub.f32 %v1711_v40, %v1564_v8 }
  0xb2   : > { %v2142_v29 = vsel %vm2001_vm13, %v2717_v1, 0.0  ;;  %v2149_v30 = vsel %vm2024_vm9, %v2718_v2, 0.0  ;;  %v2168_v5 = vsel %vm2078_vm5, 1.0, %v2721_v54  ;;  %v2722_v36 = vsub.f32 %v1725_v43, %v1572_v10 }
  0xb3   : > { %v2163_v35 = vsel %vm2043_vm7, %v2720_v4, 0.0  ;;  %v2182_v8 = vsel %vm2056_vm15, %v2723_v39, 0.0  ;;  %v2724_v40 = vsub.f32 %v1742_v47, %v1589_v14  ;;  %vm510_vm12 = vcmask 130048  }
  0xb4   : > { %v2175_v6 = vsel %vm2047_vm2, %v2722_v36, 0.0  ;;  %v2725_v10 = vsub.f32 %v1762_v53, %v1597_v16  ;;  %v2203_v46 = vsel %vm2096_vm14, %v2726_v12, 0.0  ;;  %v2727_v14 = vsub.f32 %v1890_v52, %v1641_v24 }
  0xb5   : > { %v2189_v13 = vsel %vm2060_vm6, %v2724_v40, 0.0  ;;  %v654_v16 = vsub.f32 %v2110_v32, %v2128_v0  ;;  %v655_v53 = vsub.f32 %v2121_v7, %v2135_v51  ;;  %v656_v22 = vsub.f32 %v2142_v29, %v2156_v31  ;;  %v2730_v45 = vld [vmem:[#allocation15_spill] sm:$0xff]  ;;  %v2731_v1 = vld [vmem:[#allocation14_spill] sm:$0xff] }
  0xb6   : > { %v2196_v43 = vsel %vm2074_vm0, %v2725_v10, 0.0  ;;  %v2210_v47 = vsel %vm2112_vm11, %v2727_v14, 0.0  ;;  %v657_v55 = vsub.f32 %v2149_v30, %v2163_v35  ;;  %v658_v15 = vsub.f32 %v2175_v6, %v2189_v13 }
  0xb7   : > { %v2728_v24 = vsub.f32 %v1781_v58, %v1608_v18  ;;  %v2234_v41 = vsel %vm2092_vm4, %v2729_v27, 0.0  ;;  %v659_v19 = vsub.f32 %v2182_v8, %v2196_v43  ;;  %v662_v34 = vand.u32 2147483647, %v654_v16  ;;  %v2733_v27 = vld [vmem:[#allocation13_spill] sm:$0xff] }
  0xb8   : > { %v663_v25 = vand.u32 2147483647, %v655_v53  ;;  %v664_v33 = vand.u32 2147483647, %v656_v22  ;;  %v665_v60 = vand.u32 2147483647, %v657_v55  ;;  %v670_v18 = vmul.f32 %v1991_v21, %v1953_v44 }
  0xb9   : > { %v2227_v52 = vsel %vm2078_vm5, %v2728_v24, 0.0  ;;  %v2243_v58 = vsel %vm2096_vm14, 1.0, %v2721_v54  ;;  %v661_v63 = vsub.f32 %v2234_v41, %v2210_v47  ;;  %v666_v56 = vand.u32 2147483647, %v658_v15  ;;  %v2732_v24 = vld [vmem:[#allocation12_spill] sm:$0xff] }
  0xba   : > { %v660_v20 = vsub.f32 %v2227_v52, %v2203_v46  ;;  %v672_v59 = vmul.f32 %v2054_v38, %v2032_v28  ;;  %v673_v23 = vmul.f32 %v2067_v42, %v2041_v48  ;;  %v674_v17 = vmul.f32 %v2730_v45, %v2072_v50 }
  0xbb   : > { %v2260_v61 = vsel %vm2112_vm11, 1.0, %v2721_v54  ;;  %v667_v26 = vand.u32 2147483647, %v659_v19  ;;  %v675_v2 = vmul.f32 %v2103_v9, %v2731_v1  ;;  %v678_v3 = vmul.f32 %v670_v18, %v662_v34 }
  0xbc   : > { %v2267_v4 = vsel %vm2092_vm4, 1.0, %v2721_v54  ;;  %v679_v36 = vmul.f32 %v671_v57, %v663_v25  ;;  %v680_v39 = vmul.f32 %v672_v59, %v664_v33  ;;  %v681_v40 = vmul.f32 %v673_v23, %v665_v60 }
  0xbd   : > { %v668_v10 = vand.u32 2147483647, %v660_v20  ;;  %v669_v12 = vand.u32 2147483647, %v661_v63  ;;  %v676_v49 = vmul.f32 %v2243_v58, %v2168_v5  ;;  %v686_v14 = vsel %vm510_vm12, %v678_v3, 0.0 }
  0xbe   : > { %v677_v16 = vmul.f32 %v2260_v61, %v2267_v4  ;;  %v682_v53 = vmul.f32 %v674_v17, %v666_v56  ;;  %v687_v22 = vsel %vm510_vm12, %v679_v36, 0.0  ;;  %v689_v62 = vsel %vm510_vm12, %v680_v39, 0.0 }
  0xbf   : > { %v683_v55 = vmul.f32 %v675_v2, %v667_v26  ;;  %v688_v15 = vadd.f32 %v687_v22, %v686_v14  ;;  %v2278_v19 = vor.u32 %v2733_v27, %v2732_v24  ;;  %v691_v34 = vsel %vm510_vm12, %v681_v40, 0.0 }
  0xc0   : > { %v701_v25 = vsel %vm510_vm12, %v1953_v44, 0.0  ;;  %v702_v33 = vsel %vm510_vm12, %v1972_v11, 0.0  ;;  %v704_v60 = vsel %vm510_vm12, %v1991_v21, 0.0  ;;  %v512_v18 = vsel %vm510_vm12, %v2121_v7, 0.0 }
  0xc1   : > { %v684_v20 = vmul.f32 %v676_v49, %v668_v10  ;;  %v690_v63 = vadd.f32 %v689_v62, %v688_v15  ;;  %v703_v57 = vadd.f32 %v702_v33, %v701_v25  ;;  %v514_v56 = vsel %vm510_vm12, %v2128_v0, 0.0 }
  0xc2   : > { %v2293_v59 = vmul.f32 %v2121_v7, %v2121_v7  ;;  %v685_v23 = vmul.f32 %v677_v16, %v669_v12  ;;  %v693_v17 = vsel %vm510_vm12, %v682_v53, 0.0  ;;  %v608_v26 = vsub.f32 %v2121_v7, %v2182_v8 }
  0xc3   : > { %v692_v2 = vadd.f32 %v691_v34, %v690_v63  ;;  %v705_v3 = vadd.f32 %v704_v60, %v703_v57  ;;  %v706_v36 = vsel %vm510_vm12, %v2015_v37, 0.0  ;;  %v695_v39 = vsel %vm510_vm12, %v683_v55, 0.0 }
  0xc4   : > { %v607_v40 = vsub.f32 %v2110_v32, %v2175_v6  ;;  %v609_v10 = vsub.f32 %v2128_v0, %v2189_v13  ;;  %v610_v12 = vsub.f32 %v2135_v51, %v2196_v43  ;;  %v623_v49 = vmul.f32 %v2072_v50, %v1953_v44 }
  0xc5   : > { %v624_v7 = vmul.f32 %v2731_v1, %v1972_v11  ;;  %v694_v14 = vadd.f32 %v693_v17, %v692_v2  ;;  %v697_v16 = vsel %vm510_vm12, %v684_v20, 0.0  ;;  %v699_v53 = vsel %vm510_vm12, %v685_v23, 0.0 }
  0xc6   : > { %v707_v22 = vadd.f32 %v706_v36, %v705_v3  ;;  %v511_v62 = vsel %vm510_vm12, %v2110_v32, 0.0  ;;  %v611_v55 = vsub.f32 %v2142_v29, %v2227_v52  ;;  %v708_v34 = vsel %vm510_vm12, %v2032_v28, 0.0 }
  0xc7   : > { %v696_v15 = vadd.f32 %v695_v39, %v694_v14  ;;  %v612_v44 = vsub.f32 %v2149_v30, %v2234_v41  ;;  %v615_v11 = vand.u32 2147483647, %v607_v40  ;;  %v616_v25 = vand.u32 2147483647, %v608_v26 }
  0xc8   : > { %v617_v33 = vand.u32 2147483647, %v609_v10  ;;  %v618_v60 = vand.u32 2147483647, %v610_v12  ;;  %v625_v20 = vmul.f32 %v2730_v45, %v1991_v21  ;;  %v710_v57 = vsel %vm510_vm12, %v2041_v48, 0.0 }
  0xc9   : > { %v698_v63 = vadd.f32 %v697_v16, %v696_v15  ;;  %v513_v23 = vadd.f32 %v512_v18, %v511_v62  ;;  %v613_v17 = vsub.f32 %v2156_v31, %v2203_v46  ;;  %v709_v2 = vadd.f32 %v708_v34, %v707_v22 }
  0xca   : > { %v619_v3 = vand.u32 2147483647, %v611_v55  ;;  %v626_v36 = vmul.f32 %v2103_v9, %v2015_v37  ;;  %v627_v26 = vmul.f32 %v2168_v5, %v2032_v28  ;;  %v614_v21 = vsub.f32 %v2163_v35, %v2210_v47 }
  0xcb   : > { %v2331_v39 = vadd.f32 %v699_v53, %v698_v63  ;;  %v620_v40 = vand.u32 2147483647, %v612_v44  ;;  %v628_v18 = vmul.f32 %v2267_v4, %v2041_v48  ;;  %v631_v10 = vmul.f32 %v623_v49, %v615_v11 }
  0xcc   : > { %v632_v12 = vmul.f32 %v624_v7, %v616_v25  ;;  %v633_v14 = vmul.f32 %v625_v20, %v617_v33  ;;  %v634_v16 = vmul.f32 %v626_v36, %v618_v60  ;;  %v515_v37 = vadd.f32 %v514_v56, %v513_v23 }
  0xcd   : > { %v763_v22 = vsel %vm510_vm12, %v2331_v39, 0.0  ;;  %v621_v62 = vand.u32 2147483647, %v613_v17  ;;  %v629_v28 = vmul.f32 %v2243_v58, %v2054_v38  ;;  %v635_v53 = vmul.f32 %v627_v26, %v619_v3 }
  0xce   : > { %764 = vadd.xlane.f32.xlu0 %v763_v22  ;;  %v639_v55 = vsel %vm510_vm12, %v631_v10, 0.0  ;;  %v640_v15 = vsel %vm510_vm12, %v632_v12, 0.0  ;;  %v642_v48 = vsel %vm510_vm12, %v633_v14, 0.0  ;;  %v711_v49 = vadd.f32 %v710_v57, %v709_v2 }
  0xcf   : > { %v622_v7 = vand.u32 2147483647, %v614_v21  ;;  %v630_v34 = vmul.f32 %v2260_v61, %v2067_v42  ;;  %v641_v44 = vadd.f32 %v640_v15, %v639_v55  ;;  %v636_v11 = vmul.f32 %v628_v18, %v620_v40 }
  0xd0   : > { %v644_v56 = vsel %vm510_vm12, %v634_v16, 0.0  ;;  %v516_v25 = vsel %vm510_vm12, %v2135_v51, 0.0  ;;  %v518_v33 = vsel %vm510_vm12, %v2142_v29, 0.0  ;;  %v712_v60 = vsel %vm510_vm12, %v2054_v38, 0.0 }
  0xd1   : > { %v551_v20 = vmul.f32 %v2110_v32, %v2110_v32  ;;  %v643_v63 = vadd.f32 %v642_v48, %v641_v44  ;;  %v517_v57 = vadd.f32 %v516_v25, %v515_v37  ;;  %v637_v23 = vmul.f32 %v629_v28, %v621_v62 }
  0xd2   : > { %v646_v17 = vsel %vm510_vm12, %v635_v53, 0.0  ;;  %v520_v2 = vsel %vm510_vm12, %v2149_v30, 0.0  ;;  %v732_v3 = vand.u32 1, %v2278_v19  ;;  %v568_v36 = vsel %vm510_vm12, %v2293_v59, 0.0 }
  0xd3   : > { %v714_v26 = vsel %vm510_vm12, %v2067_v42, 0.0  ;;  %v645_v38 = vadd.f32 %v644_v56, %v643_v63  ;;  %v519_v21 = vadd.f32 %v518_v33, %v517_v57  ;;  %v638_v40 = vmul.f32 %v630_v34, %v622_v7 }
  0xd4   : > { %v648_v32 = vsel %vm510_vm12, %v636_v11, 0.0  ;;  %v522_v18 = vsel %vm510_vm12, %v2156_v31, 0.0  ;;  %v713_v10 = vadd.f32 %v712_v60, %v711_v49  ;;  %v716_v12 = vsel %vm510_vm12, %v2072_v50, 0.0 }
  0xd5   : > { %v567_v14 = vsel %vm510_vm12, %v551_v20, 0.0  ;;  %v647_v16 = vadd.f32 %v646_v17, %v645_v38  ;;  %v521_v22 = vadd.f32 %v520_v2, %v519_v21  ;;  %v553_v59 = vmul.f32 %v2128_v0, %v2128_v0 }
  0xd6   : > { %v650_v42 = vsel %vm510_vm12, %v637_v23, 0.0  ;;  %v524_v37 = vsel %vm510_vm12, %v2163_v35, 0.0  ;;  %v715_v62 = vadd.f32 %v714_v26, %v713_v10  ;;  %v554_v28 = vmul.f32 %v2135_v51, %v2135_v51 }
  0xd7   : > { %v718_v53 = vsel %vm510_vm12, %v2731_v1, 0.0  ;;  %v649_v50 = vadd.f32 %v648_v32, %v647_v16  ;;  %v523_v55 = vadd.f32 %v522_v18, %v521_v22  ;;  %v569_v15 = vadd.f32 %v568_v36, %v567_v14 }
  0xd8   : > { %v652_v48 = vsel %vm510_vm12, %v638_v40, 0.0  ;;  %v526_v0 = vsel %vm510_vm12, %v2175_v6, 0.0  ;;  %v717_v49 = vadd.f32 %v716_v12, %v715_v62  ;;  %v555_v7 = vmul.f32 %v2142_v29, %v2142_v29 }
  0xd9   : > { %v651_v34 = vadd.f32 %v650_v42, %v649_v50  ;;  %v525_v44 = vadd.f32 %v524_v37, %v523_v55  ;;  %v720_v51 = vsel %vm510_vm12, %v2730_v45, 0.0  ;;  %v556_v1 = vmul.f32 %v2149_v30, %v2149_v30 }
  0xda   : > { %v528_v11 = vsel %vm510_vm12, %v2182_v8, 0.0  ;;  %v530_v56 = vsel %vm510_vm12, %v2189_v13, 0.0  ;;  %v719_v25 = vadd.f32 %v718_v53, %v717_v49  ;;  %v722_v29 = vsel %vm510_vm12, %v2103_v9, 0.0 }
  0xdb   : > { %v2391_v33 = vadd.f32 %v652_v48, %v651_v34  ;;  %v527_v60 = vadd.f32 %v526_v0, %v525_v44  ;;  %v570_v20 = vsel %vm510_vm12, %v553_v59, 0.0  ;;  %v724_v45 = vsel %vm510_vm12, %v2168_v5, 0.0 }
  0xdc   : > { %v721_v63 = vadd.f32 %v720_v51, %v719_v25  ;;  %v571_v30 = vadd.f32 %v570_v20, %v569_v15  ;;  %v572_v57 = vsel %vm510_vm12, %v554_v28, 0.0  ;;  %v557_v2 = vmul.f32 %v2156_v31, %v2156_v31 }
  0xdd   : > { %v753_v23 = vsel %vm510_vm12, %v2391_v33, 0.0  ;;  %v529_v17 = vadd.f32 %v528_v11, %v527_v60  ;;  %v574_v36 = vsel %vm510_vm12, %v555_v7, 0.0  ;;  %v532_v9 = vsel %vm510_vm12, %v2196_v43, 0.0 }
  0xde   : > { %754 = vadd.xlane.f32.xlu1 %v753_v23  ;;  %v723_v26 = vadd.f32 %v722_v29, %v721_v63  ;;  %v573_v38 = vadd.f32 %v572_v57, %v571_v30  ;;  %vm733_vm8 = vcmp.eq.s32.totalorder %v732_v3, 0  ;;  %v726_v21 = vsel %vm510_vm12, %v2267_v4, 0.0 }
  0xdf   : > { %v531_v5 = vadd.f32 %v530_v56, %v529_v17  ;;  %v558_v40 = vmul.f32 %v2163_v35, %v2163_v35  ;;  %v576_v32 = vsel %vm510_vm12, %v556_v1, 0.0  ;;  %v534_v31 = vsel %vm510_vm12, %v2227_v52, 0.0 }
  0xe0   : > { %v725_v18 = vadd.f32 %v724_v45, %v723_v26  ;;  %v575_v10 = vadd.f32 %v574_v36, %v573_v38  ;;  %v728_v14 = vsel %vm510_vm12, %v2243_v58, 0.0  ;;  %v559_v3 = vmul.f32 %v2175_v6, %v2175_v6 }
  0xe1   : > { %v533_v12 = vadd.f32 %v532_v9, %v531_v5  ;;  %v578_v16 = vsel %vm510_vm12, %v557_v2, 0.0  ;;  %v536_v4 = vsel %vm510_vm12, %v2234_v41, 0.0  ;;  %v1039_v59 = vsel %vm733_vm8, 1.0, %v2721_v54 }
  0xe2   : > { %v727_v35 = vadd.f32 %v726_v21, %v725_v18  ;;  %v577_v22 = vadd.f32 %v576_v32, %v575_v10  ;;  %v730_v37 = vsel %vm510_vm12, %v2260_v61, 0.0  ;;  %v560_v62 = vmul.f32 %v2182_v8, %v2182_v8 }
  0xe3   : > { %v535_v42 = vadd.f32 %v534_v31, %v533_v12  ;;  %v580_v58 = vsel %vm510_vm12, %v558_v40, 0.0  ;;  %v538_v6 = vsel %vm510_vm12, %v2203_v46, 0.0  ;;  %v736_v50 = vand.u32 2, %v2278_v19 }
  0xe4   : > { %v729_v28 = vadd.f32 %v728_v14, %v727_v35  ;;  %v579_v53 = vadd.f32 %v578_v16, %v577_v22  ;;  %v561_v15 = vmul.f32 %v2189_v13, %v2189_v13  ;;  %v582_v48 = vsel %vm510_vm12, %v559_v3, 0.0 }
  0xe5   : > { %v537_v55 = vadd.f32 %v536_v4, %v535_v42  ;;  %v540_v61 = vsel %vm510_vm12, %v2210_v47, 0.0  ;;  %v742_v49 = vmul.f32 %v1039_v59, %v2331_v39  ;;  %v562_v34 = vmul.f32 %v2196_v43, %v2196_v43 }
  0xe6   : > { %v731_v0 = vadd.f32 %v730_v37, %v729_v28  ;;  %v581_v8 = vadd.f32 %v580_v58, %v579_v53  ;;  %v584_v44 = vsel %vm510_vm12, %v560_v62, 0.0  ;;  %vm737_vm3 = vcmp.eq.s32.totalorder %v736_v50, 0 }
  0xe7   : > { %v539_v7 = vadd.f32 %v538_v6, %v537_v55  ;;  %v563_v1 = vmul.f32 %v2227_v52, %v2227_v52  ;;  %v586_v11 = vsel %vm510_vm12, %v561_v15, 0.0  ;;  %v793_v39 = vsel %vm510_vm12, %v742_v49, 0.0 }
  0xe8   : > { %v743_v19 = vsel %vm510_vm12, %v731_v0, 0.0  ;;  %v583_v51 = vadd.f32 %v582_v48, %v581_v8  ;;  %v740_v25 = vmul.f32 %v1039_v59, %v731_v0  ;;  %v564_v43 = vmul.f32 %v2234_v41, %v2234_v41 }
  0xe9   : > { %v541_v13 = vadd.f32 %v540_v61, %v539_v7  ;;  %744 = vadd.xlane.f32.xlu1 %v743_v19  ;;  %v588_v60 = vsel %vm510_vm12, %v562_v34, 0.0  ;;  %v1040_v29 = vsel %vm737_vm3, 1.0, %v2721_v54  ;;  %v741_v63 = vmul.f32 %v1039_v59, %v2391_v33 }
  0xea   : > { %v585_v56 = vadd.f32 %v584_v44, %v583_v51  ;;  %v565_v52 = vmul.f32 %v2203_v46, %v2203_v46  ;;  %v590_v45 = vsel %vm510_vm12, %v563_v1, 0.0  ;;  %v773_v57 = vsel %vm510_vm12, %v740_v25, 0.0 }
  0xeb   : > { %542 = vadd.xlane.f32.xlu0 %v541_v13  ;;  %v814_v23 = vmul.f32 %v1040_v29, %v741_v63  ;;  %v566_v41 = vmul.f32 %v2210_v47, %v2210_v47  ;;  %v592_v17 = vsel %vm510_vm12, %v564_v43, 0.0  ;;  %v783_v38 = vsel %vm510_vm12, %v741_v63, 0.0 }
  0xec   : > { %v587_v20 = vadd.f32 %v586_v11, %v585_v56  ;;  %v594_v54 = vsel %vm510_vm12, %v565_v52, 0.0  ;;  %v803_v5 = vmul.f32 %v1040_v29, %v740_v25  ;;  %v825_v21 = vmul.f32 %v1040_v29, %v742_v49 }
  0xed   : > { %794 = vadd.xlane.f32.xlu1 %v793_v39  ;;  %v815_v36 = vsel %vm510_vm12, %v814_v23, 0.0  ;;  %v596_v46 = vsel %vm510_vm12, %v566_v41, 0.0  ;;  %vm836_vm1 = vcmp.eq.s32.totalorder %v2732_v24, 0  ;;  %vm837_vm13 = vcmp.eq.s32.totalorder %v2733_v27, 0 }
  0xee   : > { %v589_v30 = vadd.f32 %v588_v60, %v587_v20  ;;  %v804_v47 = vsel %vm510_vm12, %v803_v5, 0.0  ;;  %v826_v40 = vsel %vm510_vm12, %v825_v21, 0.0  ;;  %vm841_vm9 = vcmp.eq.s32.totalorder %v2733_v27, 1  ;;  %vm838_vm7 = vmand %vm836_vm1, %vm837_vm13 }
  0xef   : > { %vm845_vm10 = vcmp.eq.s32.totalorder %v2733_v27, 2  ;;  %vm849_vm2 = vcmp.eq.s32.totalorder %v2733_v27, 3  ;;  %vm842_vm15 = vmand %vm836_vm1, %vm841_vm9  ;;  %vm853_vm6 = vcmp.eq.s32.totalorder %v2733_v27, 4  ;;  %vm857_vm5 = vcmp.eq.s32.totalorder %v2733_v27, 5 }
  0xf0   : > { %v591_v2 = vadd.f32 %v590_v45, %v589_v30  ;;  %vm846_vm0 = vmand %vm836_vm1, %vm845_vm10  ;;  %vm861_vm14 = vcmp.eq.s32.totalorder %v2733_v27, 6  ;;  %vm865_vm12 = vcmp.eq.s32.totalorder %v2733_v27, 7  ;;  %vm869_vm3 = vcmp.eq.s32.totalorder %v2733_v27, 8 }
  0xf1   : > { %774 = vadd.xlane.f32.xlu1 %v773_v57  ;;  %vm850_vm4 = vmand %vm836_vm1, %vm849_vm2  ;;  %vm873_vm10 = vcmp.eq.s32.totalorder %v2733_v27, 9  ;;  %vm877_vm2 = vcmp.eq.s32.totalorder %v2733_v27, 10 }
  0xf2   : > { %v593_v33 = vadd.f32 %v592_v17, %v591_v2  ;;  %vm854_vm11 = vmand %vm836_vm1, %vm853_vm6 }
  0xf3   : > { %vm858_vm8 = vmand %vm836_vm1, %vm857_vm5 }
  0xf4   : > { %v595_v9 = vadd.f32 %v594_v54, %v593_v33  ;;  %vm862_vm13 = vmand %vm836_vm1, %vm861_vm14 }
  0xf5   : > { %816 = vadd.xlane.f32.xlu1 %v815_v36  ;;  %vm866_vm9 = vmand %vm836_vm1, %vm865_vm12 }
  0xf6   : > { %v597_v26 = vadd.f32 %v596_v46, %v595_v9  ;;  %vm878_vm6 = vmand %vm836_vm1, %vm877_vm2 }
  0xf8   : > { %598 = vadd.xlane.f32.xlu0 %v597_v26 }
  0xfc   : > { %784 = vadd.xlane.f32.xlu0 %v783_v38 }
 0x100   : > { %805 = vadd.xlane.f32.xlu0 %v804_v47 }
 0x104   : > { %827 = vadd.xlane.f32.xlu0 %v826_v40 }
 0x15b   : > { %v765_v31 = vpop.xlane.xlu0 %764 }
 0x15c   : > { %v766_v59 = vrot.slane %v765_v31, 4 }
 0x15e   : > { %v767_v55 = vadd.f32 %v766_v59, %v765_v31 }
 0x160   : > { %v768_v44 = vrot.slane %v767_v55, 2 }
 0x162   : > { %v769_v29 = vadd.f32 %v768_v44, %v767_v55 }
 0x164   : > { %v770_v33 = vrot.slane %v769_v29, 1 }
 0x16b   : > { %v755_v32 = vpop.xlane.xlu1 %754 }
 0x16c   : > { %v756_v16 = vrot.slane %v755_v32, 4 }
 0x16e   : > { %v757_v62 = vadd.f32 %v756_v16, %v755_v32 }
 0x170   : > { %v758_v61 = vrot.slane %v757_v62, 2 }
 0x172   : > { %v759_v56 = vadd.f32 %v758_v61, %v757_v62 }
 0x174   : > { %v760_v30 = vrot.slane %v759_v56, 1 }
 0x176   : > { %v745_v18 = vpop.xlane.xlu1 %744  ;;  %v761_v5 = vadd.f32 %v760_v30, %v759_v56 }
 0x177   : > { %v746_v35 = vrot.slane %v745_v18, 4 }
 0x178   : > { %v543_v10 = vpop.xlane.xlu0 %542 }
 0x179   : > { %v544_v12 = vrot.slane %v543_v10, 4  ;;  %v747_v58 = vadd.f32 %v746_v35, %v745_v18  ;;  %v771_v18 = vadd.f32 %v770_v33, %v769_v29 }
 0x17a   : > { %v795_v14 = vpop.xlane.xlu1 %794 }
 0x17b   : > { %v545_v3 = vadd.f32 %v544_v12, %v543_v10  ;;  %v796_v6 = vrot.slane %v795_v14, 4  ;;  %v748_v0 = vrot.slane %v747_v58, 2 }
 0x17d   : > { %v546_v4 = vrot.slane %v545_v3, 2  ;;  %v797_v49 = vadd.f32 %v796_v6, %v795_v14  ;;  %v749_v11 = vadd.f32 %v748_v0, %v747_v58 }
 0x17e   : > { %v775_v22 = vpop.xlane.xlu1 %774 }
 0x17f   : > { %v776_v42 = vrot.slane %v775_v22, 4  ;;  %v547_v37 = vadd.f32 %v546_v4, %v545_v3  ;;  %v798_v13 = vrot.slane %v797_v49, 2  ;;  %v750_v45 = vrot.slane %v749_v11, 1 }
 0x181   : > { %v548_v28 = vrot.slane %v547_v37, 1  ;;  %v777_v53 = vadd.f32 %v776_v42, %v775_v22  ;;  %v799_v57 = vadd.f32 %v798_v13, %v797_v49  ;;  %v751_v38 = vadd.f32 %v750_v45, %v749_v11 }
 0x182   : > { %v817_v50 = vpop.xlane.xlu1 %816 }
 0x183   : > { %v818_v15 = vrot.slane %v817_v50, 4  ;;  %v549_v48 = vadd.f32 %v548_v28, %v547_v37  ;;  %v778_v34 = vrot.slane %v777_v53, 2  ;;  %v800_v47 = vrot.slane %v799_v57, 1 }
 0x185   : > { %v599_v8 = vpop.xlane.xlu0 %598  ;;  %1045 = vpush %v549_v48  ;;  %v819_v19 = vadd.f32 %v818_v15, %v817_v50  ;;  %v779_v43 = vadd.f32 %v778_v34, %v777_v53  ;;  %v801_v4 = vadd.f32 %v800_v47, %v799_v57 }
 0x186   : > { %v600_v7 = vrot.slane %v599_v8, 4 }
 0x187   : > { %v820_v60 = vrot.slane %v819_v19, 2  ;;  %v780_v2 = vrot.slane %v779_v43, 1 }
 0x188   : > { %v601_v51 = vadd.f32 %v600_v7, %v599_v8 }
 0x189   : > { %v785_v1 = vpop.xlane.xlu0 %784  ;;  %v821_v54 = vadd.f32 %v820_v60, %v819_v19  ;;  %v781_v32 = vadd.f32 %v780_v2, %v779_v43 }
 0x18a   : > { %v602_v39 = vrot.slane %v601_v51, 2  ;;  %v786_v25 = vrot.slane %v785_v1, 4 }
 0x18b   : > { %v822_v10 = vrot.slane %v821_v54, 1 }
 0x18c   : > { %v787_v20 = vadd.f32 %v786_v25, %v785_v1  ;;  %v603_v63 = vadd.f32 %v602_v39, %v601_v51 }
 0x18d   : > { %v806_v52 = vpop.xlane.xlu0 %805  ;;  %v823_v22 = vadd.f32 %v822_v10, %v821_v54 }
 0x18e   : > { %v788_v23 = vrot.slane %v787_v20, 2  ;;  %v807_v41 = vrot.slane %v806_v52, 4  ;;  %v604_v17 = vrot.slane %v603_v63, 1 }
 0x190   : > { %v808_v36 = vadd.f32 %v807_v41, %v806_v52  ;;  %v605_v46 = vadd.f32 %v604_v17, %v603_v63  ;;  %v789_v9 = vadd.f32 %v788_v23, %v787_v20 }
 0x191   : > { %v828_v26 = vpop.xlane.xlu0 %827 }
 0x192   : > { %v809_v21 = vrot.slane %v808_v36, 2  ;;  %v829_v40 = vrot.slane %v828_v26, 4  ;;  %1047 = vpush %v605_v46  ;;  %v790_v31 = vrot.slane %v789_v9, 1 }
 0x193   : > { %1049 = vpush %v751_v38 }
 0x194   : > { %v830_v12 = vadd.f32 %v829_v40, %v828_v26  ;;  %1051 = vpush %v761_v5  ;;  %v791_v14 = vadd.f32 %v790_v31, %v789_v9  ;;  %v810_v3 = vadd.f32 %v809_v21, %v808_v36 }
 0x195   : > { %1053 = vpush %v771_v18 }
 0x196   : > { %v831_v16 = vrot.slane %v830_v12, 2  ;;  %1055 = vpush %v781_v32  ;;  %v811_v35 = vrot.slane %v810_v3, 1 }
 0x197   : > { %1057 = vpush %v791_v14 }
 0x198   : > { %v832_v59 = vadd.f32 %v831_v16, %v830_v12  ;;  %1059 = vpush %v801_v4  ;;  %v812_v42 = vadd.f32 %v811_v35, %v810_v3 }
 0x19a   : > { %1061 = vpush %v812_v42  ;;  %v833_v37 = vrot.slane %v832_v59, 1 }
 0x19b   : > { %1063 = vpush %v823_v22 }
 0x19c   : > { %v834_v62 = vadd.f32 %v833_v37, %v832_v59 }
 0x19e   : > { %1065 = vpush %v834_v62 }
 0x1b6   : > { %s1046_s27 = spop %1045 }
 0x1b7   : > { %v843_v6 = vstv %s1046_s27  ;;  %s1304_s27 = smov [#allocation8]  }
 0x1c3   : > { %s1048_s11 = spop %1047 }
 0x1c4   : > { %s1050_s5 = spop %1049  ;;  %v847_v53 = vstv %s1048_s11  ;;  %s1225_s11 = sshll.u32 %s1304_s27, 4  ;;  %s1226_s11 = int_to_ptr.vmem [resolvable:$false] %s1225_s11 }
 0x1c5   : > { %v839_v58 = vstv %s1050_s5  ;;  %s1052_s7 = spop %1051  ;;  %s1227_s5 = scalar_lea.vmem %s1226_s11, 256 }
 0x1c6   : > { %v840_v28 = vsel %vm838_vm7, %v839_v58, 0.0  ;;  %s1054_s9 = spop %1053  ;;  %v851_v15 = vstv %s1052_s7  ;;  %vm870_vm7 = vmand %vm836_vm1, %vm869_vm3  ;;  %p1228_p12 = scmp.lt.s32.totalorder %s2504_s25, %s1226_s11 }
 0x1c7   : > { %v844_v50 = vsel %vm842_vm15, %v843_v6, %v840_v28  ;;  %s1056_s30 = spop %1055  ;;  %v855_v0 = vstv %s1054_s9  ;;  %vm874_vm15 = vmand %vm836_vm1, %vm873_vm10  ;;  %p1229_p0 = scmp.lt.s32.totalorder %s1227_s5, %s1221_s20 }
 0x1c8   : > { %v848_v55 = vsel %vm846_vm0, %v847_v53, %v844_v50  ;;  %v859_v48 = vstv %s1056_s30  ;;  %s1058_s29 = spop %1057 }
 0x1c9   : > { %v852_v61 = vsel %vm850_vm4, %v851_v15, %v848_v55  ;;  %v863_v8 = vstv %s1058_s29  ;;  %s1060_s1 = spop %1059  ;;  %p1230_p5 = por %p1229_p0, %p1228_p12 }
 0x1ca   : > { %v856_v49 = vsel %vm854_vm11, %v855_v0, %v852_v61  ;;  %v867_v44 = vstv %s1060_s1 }
 0x1cb   : > { %v860_v7 = vsel %vm858_vm8, %v859_v48, %v856_v49  ;;  %s1062_s17 = spop %1061  ;;  %p1231_p10 = pnand %p1230_p5, %p1224_p9 }
 0x1cc   : > { %v864_v34 = vsel %vm862_vm13, %v863_v8, %v860_v7  ;;  %v871_v19 = vstv %s1062_s17  ;;  %s1064_s6 = spop %1063 }
 0x1cd   : > { %v868_v51 = vsel %vm866_vm9, %v867_v44, %v864_v34  ;;  %v875_v13 = vstv %s1064_s6 }
 0x1ce   : > { %v872_v1 = vsel %vm870_vm7, %v871_v19, %v868_v51 }
 0x1cf   : > { %s1066_s0 = spop %1065  ;;  %v876_v27 = vsel %vm874_vm15, %v875_v13, %v872_v1 }
 0x1d0   : > { %v879_v11 = vstv %s1066_s0 }
 0x1d1   : > { %v880_v56 = vsel %vm878_vm6, %v879_v11, %v876_v27 }
 0x1d2   : > { %881 = vst [vmem:[%s262_s4] sm:$0xff] %v880_v56 }
 0x1d3   : > { %1234 = shalt.err (!%p1231_p10)
}
 0x1d4   : > { %s1235_s10 = scalar_lea.hbm %s2502_s22, 128  ;;  %s1239_s30 = scalar_lea.hbm %s2549_s3, 256 }
 0x1d5   : > { %p1236_p11 = scmp.ne.s32.totalorder %s2502_s22, %s1235_s10  ;;  %p1240_p7 = scmp.lt.u32.totalorder %s2502_s22, %s2549_s3 }
 0x1d6   : > { %p1241_p3 = scmp.lt.u32.totalorder %s1239_s30, %s1235_s10  ;;  %p1243_p13 = scmp.lt.u32.totalorder %s1235_s10, %s2502_s22 }
 0x1d7   : > { %p1237_p1 = pnand %p1236_p11, %p2734_p8 }
 0x1d8   : > { %p1242_p2 = por %p1241_p3, %p1240_p7 }
 0x1d9   : > { %p1238_p4 = pneg %p1237_p1 }
 0x1da   : > { %p1244_p6 = por %p1243_p13, %p1242_p2 }
 0x1dc   : > { %p1245_p9 = pnand %p1244_p6, %p1238_p4 }
 0x1de   : > { %1248 = shalt.err (!%p1245_p9)
}
 0x1df   : > { %1073 = dma.vmem_to_hbm [thread:$0]  (%p2734_p8), %s2504_s25, 128, %s2502_s22, %s883_s16  }
 0x1e0 PF: > { %s908_s1 = sand.u32 1, %s1279_s12   ;;  %p2735_p12 = scmp.ne.s32.totalorder %s2579_s24, 0 }
 0x1e1   : > { %p2736_p0 = scmp.ge.s32.totalorder %s1291_s15, 2  ;;  %s909_s17 = scalar_lea.sflag [#allocation4], %s908_s1 }
 0x1e3   : > { %p1086_p5 = pnand %p2736_p0, %p2735_p12 }
 0x1e5   : > { %1274 = dma.done.wait (!%p1086_p5), %s909_s17, 128  }
 0x1e6   : > { %1276 = vsyncadd (!%p1086_p5), %s909_s17, 4294967168  ;;  %p19_p10 = scmp.ge.s32.totalorder %s1350_s18, 4   ;;  %s2737_s12 = smov %s1283_s13 }
 0x1e7   : > { %s2738_s13 = smov %s1287_s14  ;;  %s2739_s14 = smov %s1362_s21 }
 0x1e8   : > { %s2740_s15 = smov %s1350_s18  ;;  %21 = sbr.rel (!%p19_p10) target bundleno = 10 (0xa), region = 101 }
 0x1ef   :  { %914 = vsyncpa [#allocation3], 1 }
 0x1f0   :  { %916 = vsyncpa [#allocation3 + $0x1], 1 }
 0x1f1   :  { %917 = vsyncpa [#allocation6], 1 }
 0x1f2   :  { %919 = vsyncpa [#allocation6 + $0x1], 1 }
 0x1f3   :  { %920 = vsyncpa [#allocation4], 1 }
 0x1f4   :  { %922 = vsyncpa [#allocation4 + $0x1], 1 }

</bundles_post_ra>
